<compile_context>
chip_gen: v5e
topology: v5e:2x2
jax: 0.10.0
libtpu: 0.0.40
codegen_flags: <defaults>
</compile_context>

<pallas_src>
import numpy as np
import jax
import jax.numpy as jnp
from jax import lax
from jax.experimental import pallas as pl
from jax.experimental.pallas import tpu as pltpu


def _interp_matrix(n_in, n_out):
    """1-D bilinear resize matrix with align_corners=True (rows sum to 1)."""
    if n_in == 1 or n_out == 1:
        m = np.zeros((n_out, n_in), np.float64)
        m[:, 0] = 1.0
        return m.astype(np.float32)
    a = np.arange(n_out, dtype=np.float64)
    src = a * (n_in - 1) / (n_out - 1)
    i0 = np.clip(np.floor(src).astype(np.int64), 0, n_in - 1)
    i1 = np.clip(i0 + 1, 0, n_in - 1)
    frac = src - i0
    m = np.zeros((n_out, n_in), np.float64)
    m[np.arange(n_out), i0] += 1.0 - frac
    m[np.arange(n_out), i1] += frac
    return m.astype(np.float32)


def _shift_select(w):
    """S[kx, v, wo] = 1 iff v == wo + kx - 1 (kx tap of a pad-1, width-3 conv)."""
    S = np.zeros((3, w, w), np.float32)
    for kx in range(3):
        for wo in range(w):
            v = wo + kx - 1
            if 0 <= v < w:
                S[kx, v, wo] = 1.0
    return S


def _pick_batch_block(n, max_imgs=16):
    """Largest divisor of n that is <= max_imgs (M ~ 256 rows at H=16) while
    keeping >= 2 grid steps when n > 1, so v7x megacore sharding stays useful."""
    if n <= 1:
        return 1
    target = min(max_imgs, max(1, n // 2))
    for nb in range(target, 0, -1):
        if n % nb == 0:
            return nb
    return 1


def _make_kernel(H, W, Cin, P, nb):
    M = nb * H
    CW = Cin * W
    PW = P * W

    def kernel(x_ref, m1_ref, b1_ref, m2_ref, b2_ref, wupc_ref, wupx_ref,
               bup_ref, lh_ref, out_ref):
        x = x_ref[...]                                         # (M, CW) f32

        # sigmoid on the pre channel only (lanes < W): lane-masked select,
        # no sub-vreg slice/concat.
        lane = lax.broadcasted_iota(jnp.int32, (1, CW), 1)
        xs = jnp.where(lane < W, jax.nn.sigmoid(x), x)         # (M, CW)
        xsb = xs.astype(jnp.bfloat16)

        # per-image boundary masks for the ky row shifts (also kill cross-image
        # leakage of the circular roll at batch-block seams).
        row = lax.broadcasted_iota(jnp.int32, (M, 1), 0)
        rmod = row % H
        not_first = rmod != 0          # row has an in-image neighbour above
        not_last = rmod != (H - 1)     # row has an in-image neighbour below

        def conv3x3(a_bf16, m_ref, b_ref):
            # One matmul per ky tap on the unshifted operand, then shift the
            # RESULTS along rows (XLU roll, co-issues with MXU) and mask.
            y0 = jnp.dot(a_bf16, m_ref[0], preferred_element_type=jnp.float32)
            y1 = jnp.dot(a_bf16, m_ref[1], preferred_element_type=jnp.float32)
            y2 = jnp.dot(a_bf16, m_ref[2], preferred_element_type=jnp.float32)
            dn = pltpu.roll(y0, shift=1, axis=0)       # dn[r] = y0[r-1]
            up = pltpu.roll(y2, shift=M - 1, axis=0)   # up[r] = y2[r+1]
            acc = (y1 + jnp.where(not_first, dn, 0.0)
                   + jnp.where(not_last, up, 0.0))
            return jnp.maximum(acc + b_ref[...], 0.0)

        h1 = conv3x3(xsb, m1_ref, b1_ref)                        # (M, PW)
        cf = conv3x3(h1.astype(jnp.bfloat16), m2_ref, b2_ref)    # (M, PW) = conv_fg

        # Width upsample of the P conv_fg planes plus the (pre + residual)
        # plane in TWO block-matrix matmuls: wres (1x1 conv) is folded into the
        # last block column of wupc; the raw pre lanes enter the last plane via
        # wupx (no in-kernel lane slicing or concatenation).
        wide = jnp.dot(cf.astype(jnp.bfloat16), wupc_ref[...],
                       preferred_element_type=jnp.float32)
        wide = wide + jnp.dot(x.astype(jnp.bfloat16), wupx_ref[...],
                              preferred_element_type=jnp.float32)  # (M, lout)

        # Height upsample: ONE block-diagonal matmul over the nb stacked
        # images, written straight to the lane-dense output slab (+ bres on
        # the pre_fg lanes via a broadcast bias row).
        out = jnp.dot(lh_ref[...], wide.astype(jnp.bfloat16),
                      preferred_element_type=jnp.float32)          # (Mo, lout)
        out_ref[...] = out + bup_ref[...]

    return kernel


def armi_forward(in_pre_fg, features, params, scale_factor=2):
    """ARMI.forward.  scale_factor==2 -> bilinear x2 path; otherwise identity
    interp, which reproduces the torch `scale_factor != 2` branch exactly."""
    N, c_pre, H, W = in_pre_fg.shape
    assert c_pre == 1
    Cf = features.shape[1]
    Cin = 1 + Cf
    P = params["b1"].shape[0]

    if scale_factor == 2:
        Ho, Wo = 2 * H, 2 * W
        lh1 = _interp_matrix(H, Ho)            # (Ho, H)
        lwT = _interp_matrix(W, Wo).T          # (W, Wo)
    else:
        Ho, Wo = H, W
        lh1 = np.eye(H, dtype=np.float32)
        lwT = np.eye(W, dtype=np.float32)

    nb = _pick_batch_block(N)
    grid = N // nb
    M, Mo = nb * H, nb * Ho
    CW, PW = Cin * W, P * W
    lanes = (P + 1) * Wo
    lout = ((lanes + 127) // 128) * 128        # lane-dense output slab width

    f32, bf16 = jnp.float32, jnp.bfloat16

    # ---- wrapper-side weight folding (pure preprocessing, done once) ----
    S = jnp.asarray(_shift_select(W))                                    # (3, W, W)
    m1 = jnp.einsum("yxcp,xvw->ycvpw", params["w1"], S).reshape(3, CW, PW).astype(bf16)
    m2 = jnp.einsum("yxqp,xvw->yqvpw", params["w2"], S).reshape(3, PW, PW).astype(bf16)
    b1l = jnp.repeat(params["b1"], W).reshape(1, PW).astype(f32)
    b2l = jnp.repeat(params["b2"], W).reshape(1, PW).astype(f32)

    lwTj = jnp.asarray(lwT)                                              # (W, Wo)
    wres = params["wres"].reshape(P)
    # Block-diagonal width-upsample matrix for the P conv_fg planes, plus the
    # 1x1 residual conv folded into the extra pre_fg block column.
    blkdiag = jnp.einsum("cd,vw->cvdw", jnp.eye(P, dtype=f32), lwTj).reshape(PW, P * Wo)
    rescol = jnp.einsum("c,vw->cvw", wres, lwTj).reshape(PW, Wo)
    wupc = jnp.concatenate([blkdiag, rescol], axis=1)                    # (PW, lanes)
    wupc = jnp.pad(wupc, ((0, 0), (0, lout - lanes))).astype(bf16)       # (PW, lout)
    # Raw pre channel -> last (pre_fg) plane; zero for feature channels.
    wupx = jnp.zeros((CW, lout), f32).at[:W, P * Wo:lanes].set(lwTj).astype(bf16)
    # Residual bias on the pre_fg lanes only (zero on conv planes / padding).
    bup = jnp.zeros((1, lout), f32).at[0, P * Wo:lanes].set(params["bres"][0])

    # Block-diagonal height-upsample matrix over the nb images stacked on rows.
    lh_blk = jnp.asarray(np.kron(np.eye(nb, dtype=np.float32), lh1)).astype(bf16)

    # Activations: rows = (image, image-row), lanes = channel-major width.
    xcat = jnp.concatenate([in_pre_fg, features], axis=1)                # (N, Cin, H, W)
    xw = jnp.transpose(xcat, (0, 2, 1, 3)).reshape(N * H, CW).astype(f32)

    kernel = _make_kernel(H, W, Cin, P, nb)

    out_flat = pl.pallas_call(
        kernel,
        out_shape=jax.ShapeDtypeStruct((N * Ho, lout), f32),
        grid=(grid,),
        in_specs=[
            pl.BlockSpec((M, CW), lambda n: (n, 0)),
            pl.BlockSpec((3, CW, PW), lambda n: (0, 0, 0)),
            pl.BlockSpec((1, PW), lambda n: (0, 0)),
            pl.BlockSpec((3, PW, PW), lambda n: (0, 0, 0)),
            pl.BlockSpec((1, PW), lambda n: (0, 0)),
            pl.BlockSpec((PW, lout), lambda n: (0, 0)),
            pl.BlockSpec((CW, lout), lambda n: (0, 0)),
            pl.BlockSpec((1, lout), lambda n: (0, 0)),
            pl.BlockSpec((Mo, M), lambda n: (0, 0)),
        ],
        out_specs=pl.BlockSpec((Mo, lout), lambda n: (n, 0)),
        compiler_params=pltpu.CompilerParams(dimension_semantics=("parallel",)),
    )(xw, m1, b1l, m2, b2l, wupc, wupx, bup, lh_blk)

    # Layout plumbing back to NCHW (outside the kernel).
    out4 = out_flat[:, :lanes].reshape(N, Ho, P + 1, Wo)
    conv_fg_up = jnp.transpose(out4[:, :, :P, :], (0, 2, 1, 3))          # (N, P, Ho, Wo)
    pre_fg = out4[:, :, P, :][:, None, :, :]                             # (N, 1, Ho, Wo)
    return pre_fg, conv_fg_up


def armi_reference(in_pre_fg, features, params, scale_factor=2):
    """Plain-JAX reference mirroring the PyTorch forward (NCHW in/out)."""
    N, _, H, W = in_pre_fg.shape
    P = params["b1"].shape[0]
    hp = lax.Precision.HIGHEST

    x = jnp.concatenate([jax.nn.sigmoid(in_pre_fg), features], axis=1)
    x = jnp.transpose(x, (0, 2, 3, 1))
    y = lax.conv_general_dilated(x, params["w1"], (1, 1), "SAME",
                                 dimension_numbers=("NHWC", "HWIO", "NHWC"),
                                 precision=hp) + params["b1"]
    y = jax.nn.relu(y)
    y = lax.conv_general_dilated(y, params["w2"], (1, 1), "SAME",
                                 dimension_numbers=("NHWC", "HWIO", "NHWC"),
                                 precision=hp) + params["b2"]
    conv_fg = jax.nn.relu(y)                                    # (N,H,W,P)

    if scale_factor == 2:
        Lh = jnp.asarray(_interp_matrix(H, 2 * H))
        Lw = jnp.asarray(_interp_matrix(W, 2 * W))
    else:
        Lh = jnp.eye(H, dtype=jnp.float32)
        Lw = jnp.eye(W, dtype=jnp.float32)

    def up(z):
        z = jnp.einsum("ah,nhwc->nawc", Lh, z, precision=hp)
        z = jnp.einsum("bw,nawc->nabc", Lw, z, precision=hp)
        return z

    conv_fg_up = up(conv_fg)
    pre_up = up(jnp.transpose(in_pre_fg, (0, 2, 3, 1)))
    residual = jnp.einsum("nabc,co->nabo", conv_fg_up,
                          params["wres"].reshape(P, 1), precision=hp) + params["bres"]
    pre_fg = pre_up + residual
    return (jnp.transpose(pre_fg, (0, 3, 1, 2)),
            jnp.transpose(conv_fg_up, (0, 3, 1, 2)))


if __name__ == "__main__":
    # N=4 exercises batch blocking (nb=2 images per grid step, 2 grid steps).
    N, Cf, H, W = 4, 3, 16, 16          # inplanes = 1 + Cf = 4
    planes = 8
    Cin = 1 + Cf

    key = jax.random.PRNGKey(0)
    k = jax.random.split(key, 8)
    in_pre_fg = jax.random.normal(k[0], (N, 1, H, W), jnp.float32)
    features = jax.random.normal(k[1], (N, Cf, H, W), jnp.float32)

    # Deterministic synthetic parameters (shapes from ARMI.__init__), HWIO layout.
    params = {
        "w1": jax.random.normal(k[2], (3, 3, Cin, planes), jnp.float32) * 0.2,
        "b1": jax.random.normal(k[3], (planes,), jnp.float32) * 0.1,
        "w2": jax.random.normal(k[4], (3, 3, planes, planes), jnp.float32) * 0.2,
        "b2": jax.random.normal(k[5], (planes,), jnp.float32) * 0.1,
        "wres": jax.random.normal(k[6], (planes, 1), jnp.float32) * 0.2,
        "bres": jax.random.normal(k[7], (1,), jnp.float32) * 0.1,
    }

    pre_fg, conv_fg_up = armi_forward(in_pre_fg, features, params, scale_factor=2)
    jax.block_until_ready((pre_fg, conv_fg_up))

    assert pre_fg.shape == (N, 1, 2 * H, 2 * W)
    assert conv_fg_up.shape == (N, planes, 2 * H, 2 * W)

    ref_pre, ref_conv = armi_reference(in_pre_fg, features, params, scale_factor=2)
    # Kernel uses single-pass bf16 MXU operands (perf-review item) vs an f32
    # HIGHEST-precision reference; tolerance reflects that precision choice,
    # not a semantic difference.
    np.testing.assert_allclose(np.asarray(pre_fg), np.asarray(ref_pre),
                               atol=3e-2, rtol=2e-2)
    np.testing.assert_allclose(np.asarray(conv_fg_up), np.asarray(ref_conv),
                               atol=3e-2, rtol=2e-2)
    print("KERNEL_OK")
</pallas_src>

<mosaic_0001>
module attributes {stable_mosaic.version = 11 : i64} {
  func.func @kernel(%arg0: i32, %arg1: memref<32x64xf32, #tpu.memory_space<vmem>>, %arg2: memref<3x64x128xbf16, #tpu.memory_space<vmem>>, %arg3: memref<1x128xf32, #tpu.memory_space<vmem>>, %arg4: memref<3x128x128xbf16, #tpu.memory_space<vmem>>, %arg5: memref<1x128xf32, #tpu.memory_space<vmem>>, %arg6: memref<128x384xbf16, #tpu.memory_space<vmem>>, %arg7: memref<64x384xbf16, #tpu.memory_space<vmem>>, %arg8: memref<1x384xf32, #tpu.memory_space<vmem>>, %arg9: memref<64x32xbf16, #tpu.memory_space<vmem>>, %arg10: memref<64x384xf32, #tpu.memory_space<vmem>>) attributes {dimension_semantics = [#tpu.dimension_semantics<parallel>], iteration_bounds = array<i64: 2>, scalar_prefetch = 0 : i64, scratch_operands = 0 : i64, tpu.core_type = #tpu.core_type<tc>, window_params = [{transform_indices = @transform_0, window_bounds = array<i64: 32, 64>}, {pipeline_mode = #tpu.pipeline_mode<synchronous>, transform_indices = @transform_1, window_bounds = array<i64: 3, 64, 128>}, {pipeline_mode = #tpu.pipeline_mode<synchronous>, transform_indices = @transform_2, window_bounds = array<i64: 1, 128>}, {pipeline_mode = #tpu.pipeline_mode<synchronous>, transform_indices = @transform_3, window_bounds = array<i64: 3, 128, 128>}, {pipeline_mode = #tpu.pipeline_mode<synchronous>, transform_indices = @transform_4, window_bounds = array<i64: 1, 128>}, {pipeline_mode = #tpu.pipeline_mode<synchronous>, transform_indices = @transform_5, window_bounds = array<i64: 128, 384>}, {pipeline_mode = #tpu.pipeline_mode<synchronous>, transform_indices = @transform_6, window_bounds = array<i64: 64, 384>}, {pipeline_mode = #tpu.pipeline_mode<synchronous>, transform_indices = @transform_7, window_bounds = array<i64: 1, 384>}, {pipeline_mode = #tpu.pipeline_mode<synchronous>, transform_indices = @transform_8, window_bounds = array<i64: 64, 32>}, {transform_indices = @transform_9, window_bounds = array<i64: 64, 384>}]} {
    %c0 = arith.constant 0 : index
    %c0_0 = arith.constant 0 : index
    %0 = vector.load %arg1[%c0, %c0_0] : memref<32x64xf32, #tpu.memory_space<vmem>>, vector<32x64xf32>
    %1 = tpu.iota {dimensions = array<i32: 1>} : vector<1x64xi32>
    %c16_i32 = arith.constant 16 : i32
    %2 = vector.broadcast %c16_i32 : i32 to vector<1x64xi32>
    %3 = arith.cmpi slt, %1, %2 : vector<1x64xi32>
    %4 = arith.negf %0 : vector<32x64xf32>
    %5 = math.exp %4 : vector<32x64xf32>
    %cst = arith.constant 1.000000e+00 : f32
    %6 = vector.broadcast %cst : f32 to vector<32x64xf32>
    %7 = arith.addf %6, %5 : vector<32x64xf32>
    %8 = arith.divf %6, %7 : vector<32x64xf32>
    %9 = vector.shape_cast %3 : vector<1x64xi1> to vector<1x64xi1>
    %10 = vector.broadcast %9 : vector<1x64xi1> to vector<32x64xi1>
    %11 = arith.select %10, %8, %0 : vector<32x64xi1>, vector<32x64xf32>
    %12 = arith.truncf %11 : vector<32x64xf32> to vector<32x64xbf16>
    %13 = tpu.iota {dimensions = array<i32: 0>} : vector<32x1xi32>
    %c16_i32_1 = arith.constant 16 : i32
    %c0_i32 = arith.constant 0 : i32
    %14 = arith.cmpi eq, %c16_i32_1, %c0_i32 : i32
    %c1_i32 = arith.constant 1 : i32
    %15 = arith.select %14, %c1_i32, %c16_i32_1 : i32
    %16 = vector.broadcast %15 : i32 to vector<32x1xi32>
    %17 = arith.remsi %13, %16 : vector<32x1xi32>
    %c0_i32_2 = arith.constant 0 : i32
    %18 = vector.broadcast %c0_i32_2 : i32 to vector<32x1xi32>
    %19 = arith.cmpi ne, %17, %18 : vector<32x1xi32>
    %c0_i32_3 = arith.constant 0 : i32
    %20 = vector.broadcast %c0_i32_3 : i32 to vector<32x1xi32>
    %21 = arith.cmpi slt, %17, %20 : vector<32x1xi32>
    %c0_i32_4 = arith.constant 0 : i32
    %22 = arith.cmpi slt, %15, %c0_i32_4 : i32
    %23 = vector.broadcast %22 : i1 to vector<32x1xi1>
    %24 = vector.broadcast %23 : vector<32x1xi1> to vector<32x1xi1>
    %25 = arith.xori %21, %24 : vector<32x1xi1>
    %26 = arith.andi %25, %19 : vector<32x1xi1>
    %27 = vector.broadcast %15 : i32 to vector<32x1xi32>
    %28 = arith.addi %17, %27 : vector<32x1xi32>
    %29 = arith.select %26, %28, %17 : vector<32x1xi1>, vector<32x1xi32>
    %c0_i32_5 = arith.constant 0 : i32
    %30 = vector.broadcast %c0_i32_5 : i32 to vector<32x1xi32>
    %31 = arith.cmpi ne, %29, %30 : vector<32x1xi32>
    %c15_i32 = arith.constant 15 : i32
    %32 = vector.broadcast %c15_i32 : i32 to vector<32x1xi32>
    %33 = arith.cmpi ne, %29, %32 : vector<32x1xi32>
    %c0_6 = arith.constant 0 : index
    %c0_7 = arith.constant 0 : index
    %c0_8 = arith.constant 0 : index
    %34 = vector.load %arg2[%c0_6, %c0_7, %c0_8] : memref<3x64x128xbf16, #tpu.memory_space<vmem>>, vector<1x64x128xbf16>
    %35 = vector.shape_cast %34 : vector<1x64x128xbf16> to vector<64x128xbf16>
    %cst_9 = arith.constant dense<0.000000e+00> : vector<32x128xf32>
    %36 = tpu.matmul %12, %35, %cst_9 {dimension_numbers = #tpu.dot_dimension_numbers<[1], [0], [0], [1], [0, 0, 1, 1], [], []>} : vector<32x64xbf16>, vector<64x128xbf16>, vector<32x128xf32> -> vector<32x128xf32>
    %c1 = arith.constant 1 : index
    %c0_10 = arith.constant 0 : index
    %c0_11 = arith.constant 0 : index
    %37 = vector.load %arg2[%c1, %c0_10, %c0_11] : memref<3x64x128xbf16, #tpu.memory_space<vmem>>, vector<1x64x128xbf16>
    %38 = vector.shape_cast %37 : vector<1x64x128xbf16> to vector<64x128xbf16>
    %cst_12 = arith.constant dense<0.000000e+00> : vector<32x128xf32>
    %39 = tpu.matmul %12, %38, %cst_12 {dimension_numbers = #tpu.dot_dimension_numbers<[1], [0], [0], [1], [0, 0, 1, 1], [], []>} : vector<32x64xbf16>, vector<64x128xbf16>, vector<32x128xf32> -> vector<32x128xf32>
    %c2 = arith.constant 2 : index
    %c0_13 = arith.constant 0 : index
    %c0_14 = arith.constant 0 : index
    %40 = vector.load %arg2[%c2, %c0_13, %c0_14] : memref<3x64x128xbf16, #tpu.memory_space<vmem>>, vector<1x64x128xbf16>
    %41 = vector.shape_cast %40 : vector<1x64x128xbf16> to vector<64x128xbf16>
    %cst_15 = arith.constant dense<0.000000e+00> : vector<32x128xf32>
    %42 = tpu.matmul %12, %41, %cst_15 {dimension_numbers = #tpu.dot_dimension_numbers<[1], [0], [0], [1], [0, 0, 1, 1], [], []>} : vector<32x64xbf16>, vector<64x128xbf16>, vector<32x128xf32> -> vector<32x128xf32>
    %c1_i32_16 = arith.constant 1 : i32
    %43 = tpu.dynamic_rotate %36 by %c1_i32_16 dim 0 : vector<32x128xf32>, i32 -> vector<32x128xf32>
    %c31_i32 = arith.constant 31 : i32
    %44 = tpu.dynamic_rotate %42 by %c31_i32 dim 0 : vector<32x128xf32>, i32 -> vector<32x128xf32>
    %cst_17 = arith.constant 0.000000e+00 : f32
    %45 = vector.shape_cast %31 : vector<32x1xi1> to vector<32x1xi1>
    %46 = vector.broadcast %45 : vector<32x1xi1> to vector<32x128xi1>
    %47 = vector.broadcast %cst_17 : f32 to vector<32x128xf32>
    %48 = arith.select %46, %43, %47 : vector<32x128xi1>, vector<32x128xf32>
    %49 = arith.addf %39, %48 : vector<32x128xf32>
    %cst_18 = arith.constant 0.000000e+00 : f32
    %50 = vector.shape_cast %33 : vector<32x1xi1> to vector<32x1xi1>
    %51 = vector.broadcast %50 : vector<32x1xi1> to vector<32x128xi1>
    %52 = vector.broadcast %cst_18 : f32 to vector<32x128xf32>
    %53 = arith.select %51, %44, %52 : vector<32x128xi1>, vector<32x128xf32>
    %54 = arith.addf %49, %53 : vector<32x128xf32>
    %c0_19 = arith.constant 0 : index
    %c0_20 = arith.constant 0 : index
    %55 = vector.load %arg3[%c0_19, %c0_20] : memref<1x128xf32, #tpu.memory_space<vmem>>, vector<1x128xf32>
    %56 = vector.broadcast %55 : vector<1x128xf32> to vector<32x128xf32>
    %57 = arith.addf %54, %56 : vector<32x128xf32>
    %cst_21 = arith.constant 0.000000e+00 : f32
    %58 = vector.broadcast %cst_21 : f32 to vector<32x128xf32>
    %59 = arith.maximumf %57, %58 : vector<32x128xf32>
    %60 = arith.truncf %59 : vector<32x128xf32> to vector<32x128xbf16>
    %c0_22 = arith.constant 0 : index
    %c0_23 = arith.constant 0 : index
    %c0_24 = arith.constant 0 : index
    %61 = vector.load %arg4[%c0_22, %c0_23, %c0_24] : memref<3x128x128xbf16, #tpu.memory_space<vmem>>, vector<1x128x128xbf16>
    %62 = vector.shape_cast %61 : vector<1x128x128xbf16> to vector<128x128xbf16>
    %cst_25 = arith.constant dense<0.000000e+00> : vector<32x128xf32>
    %63 = tpu.matmul %60, %62, %cst_25 {dimension_numbers = #tpu.dot_dimension_numbers<[1], [0], [0], [1], [0, 0, 1, 1], [], []>} : vector<32x128xbf16>, vector<128x128xbf16>, vector<32x128xf32> -> vector<32x128xf32>
    %c1_26 = arith.constant 1 : index
    %c0_27 = arith.constant 0 : index
    %c0_28 = arith.constant 0 : index
    %64 = vector.load %arg4[%c1_26, %c0_27, %c0_28] : memref<3x128x128xbf16, #tpu.memory_space<vmem>>, vector<1x128x128xbf16>
    %65 = vector.shape_cast %64 : vector<1x128x128xbf16> to vector<128x128xbf16>
    %cst_29 = arith.constant dense<0.000000e+00> : vector<32x128xf32>
    %66 = tpu.matmul %60, %65, %cst_29 {dimension_numbers = #tpu.dot_dimension_numbers<[1], [0], [0], [1], [0, 0, 1, 1], [], []>} : vector<32x128xbf16>, vector<128x128xbf16>, vector<32x128xf32> -> vector<32x128xf32>
    %c2_30 = arith.constant 2 : index
    %c0_31 = arith.constant 0 : index
    %c0_32 = arith.constant 0 : index
    %67 = vector.load %arg4[%c2_30, %c0_31, %c0_32] : memref<3x128x128xbf16, #tpu.memory_space<vmem>>, vector<1x128x128xbf16>
    %68 = vector.shape_cast %67 : vector<1x128x128xbf16> to vector<128x128xbf16>
    %cst_33 = arith.constant dense<0.000000e+00> : vector<32x128xf32>
    %69 = tpu.matmul %60, %68, %cst_33 {dimension_numbers = #tpu.dot_dimension_numbers<[1], [0], [0], [1], [0, 0, 1, 1], [], []>} : vector<32x128xbf16>, vector<128x128xbf16>, vector<32x128xf32> -> vector<32x128xf32>
    %c1_i32_34 = arith.constant 1 : i32
    %70 = tpu.dynamic_rotate %63 by %c1_i32_34 dim 0 : vector<32x128xf32>, i32 -> vector<32x128xf32>
    %c31_i32_35 = arith.constant 31 : i32
    %71 = tpu.dynamic_rotate %69 by %c31_i32_35 dim 0 : vector<32x128xf32>, i32 -> vector<32x128xf32>
    %cst_36 = arith.constant 0.000000e+00 : f32
    %72 = vector.shape_cast %31 : vector<32x1xi1> to vector<32x1xi1>
    %73 = vector.broadcast %72 : vector<32x1xi1> to vector<32x128xi1>
    %74 = vector.broadcast %cst_36 : f32 to vector<32x128xf32>
    %75 = arith.select %73, %70, %74 : vector<32x128xi1>, vector<32x128xf32>
    %76 = arith.addf %66, %75 : vector<32x128xf32>
    %cst_37 = arith.constant 0.000000e+00 : f32
    %77 = vector.shape_cast %33 : vector<32x1xi1> to vector<32x1xi1>
    %78 = vector.broadcast %77 : vector<32x1xi1> to vector<32x128xi1>
    %79 = vector.broadcast %cst_37 : f32 to vector<32x128xf32>
    %80 = arith.select %78, %71, %79 : vector<32x128xi1>, vector<32x128xf32>
    %81 = arith.addf %76, %80 : vector<32x128xf32>
    %c0_38 = arith.constant 0 : index
    %c0_39 = arith.constant 0 : index
    %82 = vector.load %arg5[%c0_38, %c0_39] : memref<1x128xf32, #tpu.memory_space<vmem>>, vector<1x128xf32>
    %83 = vector.broadcast %82 : vector<1x128xf32> to vector<32x128xf32>
    %84 = arith.addf %81, %83 : vector<32x128xf32>
    %cst_40 = arith.constant 0.000000e+00 : f32
    %85 = vector.broadcast %cst_40 : f32 to vector<32x128xf32>
    %86 = arith.maximumf %84, %85 : vector<32x128xf32>
    %87 = arith.truncf %86 : vector<32x128xf32> to vector<32x128xbf16>
    %c0_41 = arith.constant 0 : index
    %c0_42 = arith.constant 0 : index
    %88 = vector.load %arg6[%c0_41, %c0_42] : memref<128x384xbf16, #tpu.memory_space<vmem>>, vector<128x384xbf16>
    %cst_43 = arith.constant dense<0.000000e+00> : vector<32x384xf32>
    %89 = tpu.matmul %87, %88, %cst_43 {dimension_numbers = #tpu.dot_dimension_numbers<[1], [0], [0], [1], [0, 0, 1, 1], [], []>} : vector<32x128xbf16>, vector<128x384xbf16>, vector<32x384xf32> -> vector<32x384xf32>
    %90 = arith.truncf %0 : vector<32x64xf32> to vector<32x64xbf16>
    %c0_44 = arith.constant 0 : index
    %c0_45 = arith.constant 0 : index
    %91 = vector.load %arg7[%c0_44, %c0_45] : memref<64x384xbf16, #tpu.memory_space<vmem>>, vector<64x384xbf16>
    %cst_46 = arith.constant dense<0.000000e+00> : vector<32x384xf32>
    %92 = tpu.matmul %90, %91, %cst_46 {dimension_numbers = #tpu.dot_dimension_numbers<[1], [0], [0], [1], [0, 0, 1, 1], [], []>} : vector<32x64xbf16>, vector<64x384xbf16>, vector<32x384xf32> -> vector<32x384xf32>
    %93 = arith.addf %89, %92 : vector<32x384xf32>
    %c0_47 = arith.constant 0 : index
    %c0_48 = arith.constant 0 : index
    %94 = vector.load %arg9[%c0_47, %c0_48] : memref<64x32xbf16, #tpu.memory_space<vmem>>, vector<64x32xbf16>
    %95 = arith.truncf %93 : vector<32x384xf32> to vector<32x384xbf16>
    %cst_49 = arith.constant dense<0.000000e+00> : vector<64x384xf32>
    %96 = tpu.matmul %94, %95, %cst_49 {dimension_numbers = #tpu.dot_dimension_numbers<[1], [0], [0], [1], [0, 0, 1, 1], [], []>} : vector<64x32xbf16>, vector<32x384xbf16>, vector<64x384xf32> -> vector<64x384xf32>
    %c0_50 = arith.constant 0 : index
    %c0_51 = arith.constant 0 : index
    %97 = vector.load %arg8[%c0_50, %c0_51] : memref<1x384xf32, #tpu.memory_space<vmem>>, vector<1x384xf32>
    %98 = vector.broadcast %97 : vector<1x384xf32> to vector<64x384xf32>
    %99 = arith.addf %96, %98 : vector<64x384xf32>
    %c0_52 = arith.constant 0 : index
    %c0_53 = arith.constant 0 : index
    %100 = vector.load %arg10[%c0_52, %c0_53] : memref<64x384xf32, #tpu.memory_space<vmem>>, vector<64x384xf32>
    tpu.vector_store %arg10[%c0_52, %c0_53], %99 {strides = array<i32>} : memref<64x384xf32, #tpu.memory_space<vmem>>, vector<64x384xf32>,
    return
  }
  func.func @transform_0(%arg0: i32) -> (i32, i32) {
    %c0_i32 = arith.constant 0 : i32
    %c0_i32_0 = arith.constant 0 : i32
    return %arg0, %c0_i32 : i32, i32
  }
  func.func @transform_1(%arg0: i32) -> (i32, i32, i32) {
    %c0_i32 = arith.constant 0 : i32
    %c0_i32_0 = arith.constant 0 : i32
    %c0_i32_1 = arith.constant 0 : i32
    %c0_i32_2 = arith.constant 0 : i32
    return %c0_i32, %c0_i32_0, %c0_i32_1 : i32, i32, i32
  }
  func.func @transform_2(%arg0: i32) -> (i32, i32) {
    %c0_i32 = arith.constant 0 : i32
    %c0_i32_0 = arith.constant 0 : i32
    %c0_i32_1 = arith.constant 0 : i32
    return %c0_i32, %c0_i32_0 : i32, i32
  }
  func.func @transform_3(%arg0: i32) -> (i32, i32, i32) {
    %c0_i32 = arith.constant 0 : i32
    %c0_i32_0 = arith.constant 0 : i32
    %c0_i32_1 = arith.constant 0 : i32
    %c0_i32_2 = arith.constant 0 : i32
    return %c0_i32, %c0_i32_0, %c0_i32_1 : i32, i32, i32
  }
  func.func @transform_4(%arg0: i32) -> (i32, i32) {
    %c0_i32 = arith.constant 0 : i32
    %c0_i32_0 = arith.constant 0 : i32
    %c0_i32_1 = arith.constant 0 : i32
    return %c0_i32, %c0_i32_0 : i32, i32
  }
  func.func @transform_5(%arg0: i32) -> (i32, i32) {
    %c0_i32 = arith.constant 0 : i32
    %c0_i32_0 = arith.constant 0 : i32
    %c0_i32_1 = arith.constant 0 : i32
    return %c0_i32, %c0_i32_0 : i32, i32
  }
  func.func @transform_6(%arg0: i32) -> (i32, i32) {
    %c0_i32 = arith.constant 0 : i32
    %c0_i32_0 = arith.constant 0 : i32
    %c0_i32_1 = arith.constant 0 : i32
    return %c0_i32, %c0_i32_0 : i32, i32
  }
  func.func @transform_7(%arg0: i32) -> (i32, i32) {
    %c0_i32 = arith.constant 0 : i32
    %c0_i32_0 = arith.constant 0 : i32
    %c0_i32_1 = arith.constant 0 : i32
    return %c0_i32, %c0_i32_0 : i32, i32
  }
  func.func @transform_8(%arg0: i32) -> (i32, i32) {
    %c0_i32 = arith.constant 0 : i32
    %c0_i32_0 = arith.constant 0 : i32
    %c0_i32_1 = arith.constant 0 : i32
    return %c0_i32, %c0_i32_0 : i32, i32
  }
  func.func @transform_9(%arg0: i32) -> (i32, i32) {
    %c0_i32 = arith.constant 0 : i32
    %c0_i32_0 = arith.constant 0 : i32
    return %arg0, %c0_i32 : i32, i32
  }
}

</mosaic_0001>

<bundles_post_ra>
// kernel: tpu_custom_call.1
= control target key start
LH: loop header
LB: loop body
LE: loop exit
PB: predicated region body
PF: predicated region fallthrough
CT: control target
= control target key end

     0   :  { %s2987_s0 = inlined_call_operand.hbm [shape: f32[64,64], index: 0, kind: input, shape index: {}]   ;;  %s2988_s1 = inlined_call_operand.hbm [shape: bf16[3,64,128], index: 1, kind: input, shape index: {}]   ;;  %s2989_s2 = inlined_call_operand.vmem [shape: f32[1,128], index: 2, kind: input, shape index: {}]   ;;  %s2990_s3 = inlined_call_operand.hbm [shape: bf16[3,128,128], index: 3, kind: input, shape index: {}]   ;;  %s2991_s4 = inlined_call_operand.vmem [shape: f32[1,128], index: 4, kind: input, shape index: {}]   ;;  %s2992_s5 = inlined_call_operand.hbm [shape: bf16[128,384], index: 5, kind: input, shape index: {}]   ;;  %s2993_s6 = inlined_call_operand.hbm [shape: bf16[64,384], index: 6, kind: input, shape index: {}]   ;;  %s2994_s7 = inlined_call_operand.vmem [shape: f32[1,384], index: 7, kind: input, shape index: {}]   ;;  %s2995_s8 = inlined_call_operand.vmem [shape: bf16[64,32], index: 8, kind: input, shape index: {}]   ;;  %s2996_s9 = inlined_call_operand.hbm [shape: f32[128,384], index: 9, kind: output, shape index: {}]  }
   0x1   :  { %2997 = sst [smem:[#allocation16_spill]] %s2988_s1 }
   0x2   :  { %2998 = sst [smem:[#allocation17_spill]] %s2990_s3 }
   0x3   :  { %2999 = sst [smem:[#allocation18_spill]] %s2992_s5 }
   0x4   :  { %14 = vsyncpa [#allocation3], 0 }
   0x5   :  { %16 = vsyncpa [#allocation3 + $0x1], 0 }
   0x6   :  { %17 = vsyncpa [#allocation6], 0 }
   0x7   :  { %18 = vsyncpa [#allocation9], 0 }
   0x8   :  { %19 = vsyncpa [#allocation4], 0 }
   0x9   :  { %21 = vsyncpa [#allocation4 + $0x1], 0  ;;  %s2578_s30 = smov 0   ;;  %s2580_s10 = smov 0  }
   0xa   :  { %s2582_s11 = smov 0   ;;  %s2584_s12 = smov 0  }
   0xb LB: > { %s2599_s13 = sadd.s32 4294967295, %s2514_s12   ;;  %s1745_s14 = sadd.s32 4294967294, %s2514_s12   ;;  %s2514_s12 = sphi %s2584_s12, %s3021_s12   ;;  %s2510_s11 = sphi %s2582_s11, %s3020_s11   ;;  %s2506_s10 = sphi %s2580_s10, %s3019_s10   ;;  %s2502_s30 = sphi %s2578_s30, %s3018_s30  }
   0xc   : > { %p47_p0 = scmp.ne.s32.totalorder %s2506_s10, %s2502_s30  ;;  %p48_p1 = scmp.eq.s32.totalorder %s2599_s13, 0 }
   0xd   : > { %p239_p2 = scmp.eq.s32.totalorder %s2599_s13, 1  ;;  %p245_p3 = scmp.eq.s32.totalorder %s1745_s14, 1 }
   0xe   : > { %p2608_p4 = por %p48_p1, %p47_p0  ;;  %p1746_p5 = scmp.ge.s32.totalorder %s2514_s12, 1 }
   0xf   : > { %p2613_p6 = por %p245_p3, %p47_p0  ;;  %p252_p7 = scmp.lt.s32.totalorder %s2514_s12, 3 }
  0x10   : > { %s3002_s1 = sld [smem:[#allocation16_spill]]  ;;  %s2516_s21 = smov [#allocation5]  }
  0x11   : > { %p2621_p8 = pnand %p1746_p5, %p252_p7  ;;  %s265_s22 = sshll.u32 %s2516_s21, 4  ;;  %s266_s22 = int_to_ptr.vmem [resolvable:$true] %s265_s22 }
  0x12   : > { %s3005_s5 = sld [smem:[#allocation18_spill]]  ;;  %s2517_s27 = smov 64  }
  0x13   : > { %p2197_p9 = pneg %p2621_p8  ;;  %s2518_s28 = smov 4  }
  0x14   : > { %s2519_s29 = smov [#allocation8]   ;;  %s2520_s17 = smov 192  }
  0x15   : > { %p2629_p10 = pnand %p2197_p9, %p48_p1  ;;  %s299_s14 = sshll.u32 %s2519_s29, 4  ;;  %s300_s14 = int_to_ptr.vmem [resolvable:$true] %s299_s14 }
  0x16   : > { %s263_s19 = sshll.u32 %s3002_s1, 4  ;;  %s2521_s18 = smov 12   ;;  %s264_s19 = int_to_ptr.hbm [resolvable:$true] %s263_s19 }
  0x17   : > { %2200 = dma.hbm_to_vmem [thread:$0]  (!%p2629_p10), %s264_s19, 1536, %s266_s22, [#allocation6], %s2517_s27, %s2517_s27, %s2518_s28  }
  0x18   : > { %s297_s26 = sshll.u32 %s3005_s5, 4  ;;  %s3006_s3 = sld [smem:[#allocation17_spill]]  ;;  %s298_s26 = int_to_ptr.hbm [resolvable:$true] %s297_s26 }
  0x19   : > { %2206 = dma.hbm_to_vmem [thread:$0]  (!%p2629_p10), %s298_s26, 3072, %s300_s14, [#allocation9], %s2520_s17, %s2520_s17, %s2521_s18  }
  0x1a   : > { %s2522_s19 = smov [#allocation7]   ;;  %s311_s5 = sshll.u32 %s2993_s6, 4  ;;  %s312_s5 = int_to_ptr.hbm [resolvable:$true] %s311_s5 }
  0x1b   : > { %s282_s22 = sshll.u32 %s2522_s19, 4  ;;  %s2523_s26 = smov [#allocation10]   ;;  %s283_s22 = int_to_ptr.vmem [resolvable:$true] %s282_s22 }
  0x1c   : > { %s313_s14 = sshll.u32 %s2523_s26, 4  ;;  %s2652_s21 = sadd.s32 1, %s2514_s12   ;;  %s314_s14 = int_to_ptr.vmem [resolvable:$true] %s313_s14 }
  0x1d   : > { %2209 = dma.hbm_to_vmem [thread:$0]  (!%p2629_p10), %s312_s5, 1536, %s314_s14, [#allocation9], %s2520_s17, %s2520_s17, %s2521_s18  }
  0x1e   : > { %s280_s25 = sshll.u32 %s3006_s3, 4  ;;  %s34_s24 = sadd.s32 1, %s2510_s11  ;;  %s281_s25 = int_to_ptr.hbm [resolvable:$true] %s280_s25 }
  0x1f   : > { %2203 = dma.hbm_to_vmem [thread:$0]  (!%p2629_p10), %s281_s25, 3072, %s283_s22, [#allocation6], %s2517_s27, %s2517_s27, %s2518_s28  }
  0x20   : > { %s31_s19 = ssub.s32 %s2514_s12, %s2652_s21  ;;  %p41_p12 = scmp.ne.s32.totalorder %s2510_s11, %s2506_s10 }
  0x21   : > { %p32_p13 = scmp.eq.s32.totalorder %s31_s19, 0  ;;  %p42_p0 = scmp.eq.s32.totalorder %s2514_s12, 0 }
  0x22   : > { %p2662_p3 = por %p239_p2, %p41_p12  ;;  %p2222_p5 = scmp.lt.s32.totalorder %s2514_s12, 2 }
  0x23   : > { %s2668_s27 = scalar_select %p32_p13, %s2510_s11, %s34_s24  }
  0x24   : > { %p43_p7 = por %p42_p0, %p41_p12  ;;  %s333_s28 = sand.u32 1, %s2510_s11  }
  0x25   : > { %s1752_s23 = sshll.u32 %s333_s28, 5  ;;  %s2098_s5 = sshll.u32 %s2514_s12, 5 }
  0x26   : > { %s342_s25 = scalar_lea.hbm %s2987_s0, %s2098_s5  ;;  %s337_s22 = scalar_lea.vmem [#allocation2], %s1752_s23 }
  0x27   : > { %s345_s29 = sshll.u32 %s337_s22, 4  ;;  %s343_s26 = sshll.u32 %s342_s25, 4  ;;  %s346_s29 = int_to_ptr.vmem [resolvable:$true] %s345_s29  ;;  %s344_s26 = int_to_ptr.hbm [resolvable:$true] %s343_s26 }
  0x28   : > { %p2675_p2 = pnand %p2222_p5, %p43_p7  ;;  %s334_s24 = scalar_lea.sflag [#allocation3], %s333_s28 }
  0x29   : > { %s2410_s19 = sshra.s32 %s344_s26, 4  ;;  %s2417_s17 = scalar_lea.hbm %s2987_s0, 64  ;;  %s2411_s19 = int_to_ptr.hbm [resolvable:$true] %s2410_s19 }
  0x2a   : > { %s2412_s3 = scalar_lea.hbm %s2411_s19, 32  ;;  %p2414_p10 = pneg %p2675_p2 }
  0x2b   : > { %p2413_p9 = scmp.ne.s32.totalorder %s2411_s19, %s2412_s3  ;;  %p2418_p0 = scmp.lt.s32.totalorder %s2411_s19, %s2987_s0 }
  0x2c   : > { %p2419_p5 = scmp.lt.s32.totalorder %s2417_s17, %s2412_s3 }
  0x2d   : > { %p2415_p12 = pnand %p2414_p10, %p2413_p9 }
  0x2e   : > { %p2420_p7 = por %p2419_p5, %p2418_p0 }
  0x2f   : > { %p2416_p13 = pneg %p2415_p12 }
  0x31   : > { %p2421_p11 = pnand %p2420_p7, %p2416_p13 }
  0x33   : > { %2424 = shalt.err (!%p2421_p11)
}
  0x34   : > { %s2524_s28 = smov 128   ;;  %s2525_s22 = smov 8  }
  0x35   : > { %2213 = dma.hbm_to_vmem [thread:$0]  (!%p2675_p2), %s344_s26, 512, %s346_s29, %s334_s24, %s2524_s28, %s2524_s28, %s2525_s22  }
  0x36   : > { %357 = sbr.rel (%p2621_p8) target bundleno = 801 (0x321), region = 56  ;;  %s2692_s5 = sand.u32 (!%p2621_p8), 1, %s2506_s10  }
  0x37   : > { %s1756_s23 = sshll.u32 (!%p2621_p8), %s2692_s5, 5  ;;  %s360_s19 = scalar_lea.sflag (!%p2621_p8), [#allocation3], %s2692_s5 }
  0x38   : > { %s363_s3 = scalar_lea.vmem (!%p2621_p8), [#allocation2], %s1756_s23 }
  0x3b   : > { %2485 = dma.done.wait (%p2608_p4), %s360_s19, 512  }
  0x3c   : > { %2487 = vsyncadd (%p2608_p4), %s360_s19, 4294966784 }
  0x3d   : > { %2489 = dma.done.wait (%p48_p1), [#allocation6], 4608  }
  0x3e   : > { %2491 = vsyncadd (%p48_p1), [#allocation6], 4294962688 }
  0x3f   : > { %2493 = dma.done.wait (%p48_p1), [#allocation9], 4608  }
  0x40   : > { %2495 = vsyncadd (%p48_p1), [#allocation9], 4294962688  ;;  %v2102_v0 = vld [vmem:[#allocation5 + $0x18] sm:$0xff]  ;;  %v2101_v3 = vld [vmem:[#allocation5 + $0x10] sm:$0xff]  ;;  %v426_v29 = vlaneseq  ;;  %vm606_vm11 = vcmask 523264   ;;  %s2175_s15 = smul.u32 192, %s2692_s5 }
  0x41   : > { %v2110_v1 = vld [vmem:[#allocation5 + $0x58] sm:$0xff]  ;;  %617 = vmatpush.bf16.msra.mxu3 %v2102_v0  ;;  %v2109_v4 = vld [vmem:[#allocation5 + $0x50] sm:$0xff]  ;;  %v2708_v6 = vld [vmem:[%s363_s3] sm:$0xff]  ;;  %s2176_s29 = smul.u32 192, %s2599_s13  ;;  %s1618_s13 = scalar_lea.sflag [#allocation4], %s2692_s5 }
  0x42   : > { %v2106_v2 = vld [vmem:[#allocation5 + $0x38] sm:$0xff]  ;;  %678 = vmatpush.bf16.msra.mxu1 %v2110_v1  ;;  %v2105_v5 = vld [vmem:[#allocation5 + $0x30] sm:$0xff]  ;;  %v2100_v7 = vld [vmem:[#allocation5 + $0x8] sm:$0xff]  ;;  %v1761_v9 = vmul.f32 -1.442695, %v2708_v6  ;;  %v2731_v33 = vand.u32 127, %v426_v29 }
  0x43   : > { %751 = vmatpush.bf16.msra.mxu2 %v2106_v2  ;;  %v2710_v8 = vld [vmem:[%s363_s3 + $0x8] sm:$0xff]  ;;  %v2713_v10 = vld [vmem:[%s363_s3 + $0x10] sm:$0xff]  ;;  %v2720_v14 = vld [vmem:[%s363_s3 + $0x18] sm:$0xff]  ;;  %s2900_s20 = scalar_lea.vmem [#allocation11], %s2175_s15  ;;  %s1630_s24 = scalar_lea.hbm %s2996_s9, %s2176_s29 }
  0x44   : > { %v2108_v11 = vld [vmem:[#allocation5 + $0x48] sm:$0xff]  ;;  %v1762_v12 = vmul.f32 -1.442695, %v2710_v8  ;;  %v2718_v13 = vpack.c.bf16 %v2710_v8, %v2708_v6  ;;  %v1763_v15 = vmul.f32 -1.442695, %v2713_v10  ;;  %2274 = vpow2.f32 %v1761_v9  ;;  %v2099_v18 = vld [vmem:[#allocation5] sm:$0xff] }
  0x45   : > { %618 = vmatpush.bf16.msra.mxu3 %v2101_v3  ;;  %v1764_v16 = vmul.f32 -1.442695, %v2720_v14  ;;  %v2104_v17 = vld [vmem:[#allocation5 + $0x28] sm:$0xff]  ;;  %v2107_v19 = vld [vmem:[#allocation5 + $0x40] sm:$0xff]  ;;  %vm428_vm7 = vcmp.lt.s32.totalorder %v2731_v33, 16  ;;  %v2113_v33 = vld [vmem:[#allocation7 + $0x10] sm:$0xff] }
  0x46   : > { %679 = vmatpush.bf16.msra.mxu1 %v2109_v4  ;;  %2276 = vpow2.f32 %v1762_v12  ;;  %v2103_v20 = vld [vmem:[#allocation5 + $0x20] sm:$0xff]  ;;  %s1631_s17 = sshll.u32 %s2900_s20, 4  ;;  %s1633_s18 = sshll.u32 %s1630_s24, 4  ;;  %s1632_s17 = int_to_ptr.vmem [resolvable:$true] %s1631_s17  ;;  %s1634_s18 = int_to_ptr.hbm [resolvable:$true] %s1633_s18 }
  0x47   : > { %752 = vmatpush.bf16.msra.mxu2 %v2105_v5  ;;  %2278 = vpow2.f32 %v1763_v15  ;;  %s2454_s25 = sshra.s32 %s1634_s18, 4  ;;  %s2460_s19 = scalar_lea.hbm %s2996_s9, 384  ;;  %s2455_s25 = int_to_ptr.hbm [resolvable:$true] %s2454_s25 }
  0x48   : > { %2280 = vpow2.f32 %v1764_v16  ;;  %v2118_v16 = vld [vmem:[#allocation7 + $0x38] sm:$0xff]  ;;  %s2456_s28 = scalar_lea.hbm %s2455_s25, 192  ;;  %p2461_p11 = scmp.lt.s32.totalorder %s2455_s25, %s2996_s9 }
  0x49   : > { %619 = vmatpush.bf16.msra.mxu3 %v2100_v7  ;;  %p2457_p1 = scmp.ne.s32.totalorder %s2455_s25, %s2456_s28  ;;  %p2462_p2 = scmp.lt.s32.totalorder %s2460_s19, %s2456_s28 }
  0x4a   : > { %680 = vmatpush.bf16.msra.mxu1 %v2108_v11  ;;  %v2275_v21 = vpop.eup %2274 }
  0x4b   : > { %753 = vmatpush.bf16.msra.mxu2 %v2104_v17  ;;  %v441_v23 = vadd.f32 1.0, %v2275_v21  ;;  %v2134_v17 = vld [vmem:[#allocation7 + $0xb8] sm:$0xff]  ;;  %v2125_v21 = vld [vmem:[#allocation7 + $0x70] sm:$0xff]  ;;  %p2458_p4 = pnand %p2457_p1, %p2662_p3  ;;  %p2463_p9 = por %p2462_p2, %p2461_p11 }
  0x4c   : > { %v2277_v22 = vpop.eup %2276  ;;  %961 = vmatpush.bf16.msra.mxu0 %v2134_v17 }
  0x4d   : > { %v2279_v24 = vpop.eup %2278  ;;  %620 = vmatpush.bf16.msra.mxu3 %v2099_v18  ;;  %v442_v25 = vadd.f32 1.0, %v2277_v22  ;;  %2282 = vrcp.f32 %v441_v23  ;;  %vm450_vm0 = vweird.f32 %v441_v23  ;;  %v456_v34 = vand.u32 2147483648, %v441_v23  ;;  %v2126_v18 = vld [vmem:[#allocation7 + $0x78] sm:$0xff]  ;;  %v2116_v22 = vld [vmem:[#allocation7 + $0x28] sm:$0xff]  ;;  %p2459_p8 = pneg %p2458_p4 }
  0x4e   : > { %681 = vmatpush.bf16.msra.mxu1 %v2107_v19  ;;  %v2281_v26 = vpop.eup %2280  ;;  %v2724_v27 = vadd.f32 1.0, %v2279_v24  ;;  %v454_v37 = vand.u32 2147483647, %v441_v23  ;;  %v2117_v19 = vld [vmem:[#allocation7 + $0x30] sm:$0xff]  ;;  %v2124_v24 = vld [vmem:[#allocation7 + $0x68] sm:$0xff] }
  0x4f   : > { %754 = vmatpush.bf16.msra.mxu2 %v2103_v20  ;;  %2284 = vrcp.f32 %v442_v25  ;;  %v2726_v28 = vadd.f32 1.0, %v2281_v26  ;;  %v471_v38 = vand.u32 2147483648, %v442_v25  ;;  %vm465_vm2 = vweird.f32 %v442_v25  ;;  %v2133_v20 = vld [vmem:[#allocation7 + $0xb0] sm:$0xff]  ;;  %v2131_v26 = vld [vmem:[#allocation7 + $0xa0] sm:$0xff]  ;;  %p2464_p10 = pnand %p2463_p9, %p2459_p8 }
  0x50   : > { %2286 = vrcp.f32 %v2724_v27  ;;  %v469_v41 = vand.u32 2147483647, %v442_v25  ;;  %v457_v45 = vor.u32 1.1754944e-38, %v456_v34  ;;  %vm455_vm5 = vcmp.eq.f32.partialorder %v454_v37, 8.507059e+37  ;;  %962 = vmatpush.bf16.msra.mxu0 %v2133_v20  ;;  %v2129_v34 = vld [vmem:[#allocation7 + $0x90] sm:$0xff]  ;;  %v2128_v37 = vld [vmem:[#allocation7 + $0x88] sm:$0xff] }
  0x51   : > { %2288 = vrcp.f32 %v2726_v28  ;;  %v472_v49 = vor.u32 1.1754944e-38, %v471_v38  ;;  %vm480_vm9 = vweird.f32 %v2724_v27  ;;  %vm495_vm12 = vweird.f32 %v2726_v28  ;;  %860 = vmatpush.bf16.msrb.mxu3 %v2118_v16  ;;  %v2120_v38 = vld [vmem:[#allocation7 + $0x48] sm:$0xff]  ;;  %v2162_v20 = vld [vmem:[#allocation10 + $0x1c] sm:$0xf] }
  0x52   : > { %vm470_vm8 = vcmp.eq.f32.partialorder %v469_v41, 8.507059e+37  ;;  %v486_v62 = vand.u32 2147483648, %v2724_v27  ;;  %v501_v63 = vand.u32 2147483648, %v2726_v28  ;;  %v484_v1 = vand.u32 2147483647, %v2724_v27  ;;  %1048 = vmatpush.bf16.msrb.mxu1 %v2126_v18  ;;  %v2127_v41 = vld [vmem:[#allocation7 + $0x80] sm:$0xff] }
  0x53   : > { %v2283_v30 = vpop.eup %2282  ;;  %v499_v3 = vand.u32 2147483647, %v2726_v28 }
  0x54   : > { %v446_v32 = vmul.f32 %v2283_v30, %v441_v23  ;;  %vm451_vm1 = vweird.f32 %v2283_v30  ;;  %v487_v4 = vor.u32 1.1754944e-38, %v486_v62  ;;  %v502_v5 = vor.u32 1.1754944e-38, %v501_v63  ;;  %v2132_v23 = vld [vmem:[#allocation7 + $0xa8] sm:$0xff] }
  0x55   : > { %v2285_v31 = vpop.eup %2284  ;;  %vm452_vm4 = vmor %vm450_vm0, %vm451_vm1  ;;  %vm485_vm0 = vcmp.eq.f32.partialorder %v484_v1, 8.507059e+37  ;;  %vm500_vm1 = vcmp.eq.f32.partialorder %v499_v3, 8.507059e+37  ;;  %861 = vmatpush.bf16.msrb.mxu3 %v2117_v19  ;;  %963 = vmatpush.bf16.msra.mxu0 %v2132_v23  ;;  %v1955_v1 = vld [vmem:[#allocation10 + $0x54] sm:$0xf0] }
  0x56   : > { %v461_v35 = vmul.f32 %v2285_v31, %v442_v25  ;;  %v447_v36 = vsub.f32 1.0, %v446_v32  ;;  %v2287_v39 = vpop.eup %2286  ;;  %vm466_vm3 = vweird.f32 %v2285_v31  ;;  %1049 = vmatpush.bf16.msrb.mxu1 %v2125_v21  ;;  %v2115_v25 = vld [vmem:[#allocation7 + $0x20] sm:$0xff]  ;;  %v1931_v21 = vld [vmem:[#allocation10 + $0x24] sm:$0xf0] }
  0x57   : > { %v2289_v42 = vpop.eup %2288  ;;  %v476_v44 = vmul.f32 %v2287_v39, %v2724_v27  ;;  %vm467_vm6 = vmor %vm465_vm2, %vm466_vm3  ;;  %vm481_vm10 = vweird.f32 %v2287_v39  ;;  %v2123_v27 = vld [vmem:[#allocation7 + $0x60] sm:$0xff] }
  0x58   : > { %v462_v40 = vsub.f32 1.0, %v461_v35  ;;  %v448_v43 = vmul.f32 %v2283_v30, %v447_v36  ;;  %v491_v47 = vmul.f32 %v2289_v42, %v2726_v28  ;;  %vm496_vm13 = vweird.f32 %v2289_v42  ;;  %vm482_vm14 = vmor %vm480_vm9, %vm481_vm10  ;;  %v2114_v28 = vld [vmem:[#allocation7 + $0x18] sm:$0xff]  ;;  %v2121_v35 = vld [vmem:[#allocation7 + $0x50] sm:$0xff] }
  0x59   : > { %v477_v50 = vsub.f32 1.0, %v476_v44  ;;  %vm497_vm15 = vmor %vm495_vm12, %vm496_vm13  ;;  %862 = vmatpush.bf16.msrb.mxu3 %v2116_v22  ;;  %964 = vmatpush.bf16.msra.mxu0 %v2131_v26  ;;  %v2112_v36 = vld [vmem:[#allocation7 + $0x8] sm:$0xff] }
  0x5a   : > { %v463_v46 = vmul.f32 %v2285_v31, %v462_v40  ;;  %v449_v48 = vadd.f32 %v2283_v30, %v448_v43  ;;  %v492_v52 = vsub.f32 1.0, %v491_v47  ;;  %1050 = vmatpush.bf16.msrb.mxu1 %v2124_v24  ;;  %v2111_v40 = vld [vmem:[#allocation7] sm:$0xff] }
  0x5b   : > { %v478_v56 = vmul.f32 %v2287_v39, %v477_v50 }
  0x5c   : > { %v464_v51 = vadd.f32 %v2285_v31, %v463_v46  ;;  %v453_v53 = vsel %vm452_vm4, %v2283_v30, %v449_v48  ;;  %v493_v57 = vmul.f32 %v2289_v42, %v492_v52  ;;  %v2130_v30 = vld [vmem:[#allocation7 + $0x98] sm:$0xff] }
  0x5d   : > { %v458_v54 = vsel %vm455_vm5, %v457_v45, %v453_v53  ;;  %v479_v0 = vadd.f32 %v2287_v39, %v478_v56  ;;  %863 = vmatpush.bf16.msrb.mxu3 %v2115_v25  ;;  %965 = vmatpush.bf16.msra.mxu0 %v2130_v30  ;;  %v2764_v45 = vshrl.u32 %v426_v29, 7  ;;  %v1934_v30 = vor.u32 %v2162_v20, %v1931_v21  ;;  %v2045_v21 = vld [vmem:[#allocation8 + $0x9c] sm:$0xf0] }
  0x5e   : > { %v468_v55 = vsel %vm467_vm6, %v2285_v31, %v464_v51  ;;  %v507_v59 = vsel %vm428_vm7, %v458_v54, %v2708_v6  ;;  %v494_v2 = vadd.f32 %v2289_v42, %v493_v57  ;;  %1051 = vmatpush.bf16.msrb.mxu1 %v2123_v27  ;;  %v2122_v31 = vld [vmem:[#allocation7 + $0x58] sm:$0xff] }
  0x5f   : > { %v473_v58 = vsel %vm470_vm8, %v472_v49, %v468_v55  ;;  %v483_v6 = vsel %vm482_vm14, %v2287_v39, %v479_v0  ;;  %v515_v47 = vadd.s32 8, %v2764_v45  ;;  %vm706_vm2 = vcmp.lt.s32.totalorder %v2764_v45, 7  ;;  %v2168_v0 = vld [vmem:[#allocation10 + $0x4c] sm:$0xf] }
  0x60   : > { %v508_v60 = vsel %vm428_vm7, %v473_v58, %v2710_v8  ;;  %v498_v7 = vsel %vm497_vm15, %v2289_v42, %v494_v2  ;;  %v488_v8 = vsel %vm485_vm0, %v487_v4, %v483_v6  ;;  %v2119_v42 = vld [vmem:[#allocation7 + $0x40] sm:$0xff]  ;;  %vm697_vm3 = vcmp.lt.s32.totalorder %v2764_v45, 1  ;;  %v2165_v2 = vld [vmem:[#allocation10 + $0x34] sm:$0xf] }
  0x61   : > { %v511_v61 = vpack.c.bf16 %v508_v60, %v507_v59  ;;  %v503_v9 = vsel %vm500_vm1, %v502_v5, %v498_v7  ;;  %v509_v11 = vsel %vm428_vm7, %v488_v8, %v2713_v10  ;;  %864 = vmatpush.bf16.msrb.mxu3 %v2114_v28  ;;  %966 = vmatpush.bf16.msra.mxu0 %v2129_v34  ;;  %v529_v53 = vand.u32 15, %v515_v47  ;;  %v1943_v6 = vld [vmem:[#allocation10 + $0x3c] sm:$0xf0]  ;;  %v1953_v7 = vld [vmem:[#allocation10 + $0x48] sm:$0xf] }
  0x62   : > { %v510_v12 = vsel %vm428_vm7, %v503_v9, %v2720_v14  ;;  %1052 = vmatpush.bf16.msrb.mxu1 %v2122_v31  ;;  %v522_v58 = vand.u32 15, %v2764_v45  ;;  %v1958_v5 = vor.u32 %v2168_v0, %v1955_v1  ;;  %v2169_v9 = vld [vmem:[#allocation10 + $0x50] sm:$0xf0]  ;;  %v1946_v16 = vor.u32 %v2165_v2, %v1943_v6  ;;  %v1917_v1 = vld [vmem:[#allocation10] sm:$0xf] }
  0x63   : > { %1781 = vmatmul.msk.bf16.vlgmr.msra.gmra.mxu3 %vm606_vm11, %v511_v61  ;;  %1799 = vmatmul.msk.bf16.vlgmr.msra.gmra.mxu1 %vm606_vm11, %v511_v61  ;;  %v512_v15 = vpack.c.bf16 %v510_v12, %v509_v11  ;;  %vm2772_vm4 = vcmp.ne.s32.totalorder %v529_v53, 15  ;;  %v2272_v12 = vld [vmem:[%s2989_s2] ss:$0 sm:$0xff]  ;;  %v1954_v17 = vor.u32 %v2169_v9, %v1953_v7  ;;  %v517_v24 = vadd.s32 24, %v2764_v45  ;;  %v2160_v2 = vld [vmem:[#allocation10 + $0x8] sm:$0xf0] }
  0x64   : > { %1817 = vmatmul.msk.bf16.vlgmr.msra.gmra.mxu2 %vm606_vm11, %v511_v61  ;;  %v516_v61 = vadd.s32 16, %v2764_v45  ;;  %vm2786_vm5 = vcmp.ne.s32.totalorder %v522_v58, 0  ;;  %v1941_v58 = vld [vmem:[#allocation10 + $0x30] sm:$0xf]  ;;  %v2157_v6 = vld [vmem:[#allocation8 + $0xb0] sm:$0xf0] }
  0x65   : > { %865 = vmatpush.bf16.msrb.mxu3 %v2113_v33  ;;  %967 = vmatpush.bf16.msra.mxu0 %v2128_v37  ;;  %v543_v34 = vand.u32 15, %v517_v24  ;;  %v2156_v7 = vld [vmem:[#allocation8 + $0xac] sm:$0xf]  ;;  %v2057_v9 = vld [vmem:[#allocation8 + $0xb4] sm:$0xf0]  ;;  %vm1493_vm8 = vcmask 261120  }
  0x66   : > { %1053 = vmatpush.bf16.msrb.mxu1 %v2121_v35  ;;  %v536_v18 = vand.u32 15, %v516_v61  ;;  %1213 = vmatpush.bf16.msrb.mxu2 %v1954_v17  ;;  %v1919_v61 = vld [vmem:[#allocation10 + $0xc] sm:$0xf0] }
  0x67   : > { %vm2811_vm7 = vcmp.ne.s32.totalorder %v543_v34, 15  ;;  %v2043_v17 = vld [vmem:[#allocation8 + $0x90] sm:$0xf]  ;;  %v2039_v34 = vld [vmem:[#allocation8 + $0x80] sm:$0xf] }
  0x68   : > { %vm2801_vm6 = vcmp.ne.s32.totalorder %v536_v18, 0  ;;  %v2154_v18 = vld [vmem:[#allocation8 + $0x98] sm:$0xf0] }
  0x69   : > { %866 = vmatpush.bf16.msrb.mxu3 %v2112_v36  ;;  %968 = vmatpush.bf16.msra.mxu0 %v2127_v41  ;;  %v2044_v20 = vor.u32 %v2154_v18, %v2043_v17  ;;  %v2138_v17 = vld [vmem:[#allocation8 + $0x1c] sm:$0xf] }
  0x6a   : > { %1054 = vmatpush.bf16.msrb.mxu1 %v2120_v38 }
  0x6d   : > { %867 = vmatpush.bf16.msrb.mxu3 %v2111_v40 }
  0x6e   : > { %1055 = vmatpush.bf16.msrb.mxu1 %v2119_v42 }
  0x71   : > { %1232 = vmatpush.bf16.msra.mxu3 %v1958_v5  ;;  %v2055_v5 = vld [vmem:[#allocation8 + $0xa8] sm:$0xf] }
  0x73   : > { %1782 = vmatmul.msk.bf16.gmra.mxu3 %vm606_vm11, %v512_v15  ;;  %1800 = vmatmul.msk.bf16.gmra.mxu1 %vm606_vm11, %v512_v15 }
  0x74   : > { %1818 = vmatmul.msk.bf16.gmra.mxu2 %vm606_vm11, %v512_v15 }
  0x75   : > { %1233 = vmatpush.bf16.msra.mxu3 %v1946_v16 }
  0x79   : > { %1234 = vmatpush.bf16.msra.mxu3 %v1934_v30  ;;  %v2150_v30 = vld [vmem:[#allocation8 + $0x7c] sm:$0xf] }
  0xe0   : > { %v2761_v32 = vpop.f32.mrf.mxu1 }
  0xe1   : > { %v702_v8 = vrot.slane %v2761_v32, 1 }
  0xe6   : > { %v622_v39 = vpop.f32.mrf.mxu3 }
  0xe7   : > { %v756_v44 = vpop.f32.mrf.mxu2  ;;  %v693_v55 = vrot.slane %v622_v39, 7 }
  0xe8   : > { %v685_v43 = vpop.f32.mrf.mxu1 }
  0xe9   : > { %v703_v50 = vrot.slane %v685_v43, 1 }
  0xeb   : > { %v709_v25 = vsel %vm706_vm2, %v702_v8, %v703_v50 }
  0xee   : > { %v624_v46 = vpop.f32.mrf.mxu3 }
  0xef   : > { %v758_v49 = vpop.f32.mrf.mxu2  ;;  %v694_v51 = vrot.slane %v624_v46, 7 }
  0xf0   : > { %v2767_v48 = vpop.f32.mrf.mxu1 }
  0xf1   : > { %v704_v52 = vrot.slane %v2767_v48, 1  ;;  %v700_v56 = vsel %vm697_vm3, %v693_v55, %v694_v51 }
  0xf2   : > { %v759_v59 = vadd.f32 %v758_v49, %v700_v56 }
  0xf3   : > { %v708_v57 = vsel %vm706_vm2, %v703_v50, %v704_v52 }
  0xf4   : > { %v775_v60 = vsel %vm2772_vm4, %v708_v57, 0.0 }
  0xf5   : > { %v779_v11 = vadd.f32 %v775_v60, %v759_v59  ;;  %v2166_v59 = vld [vmem:[#allocation10 + $0x38] sm:$0xf0]  ;;  %v2159_v60 = vld [vmem:[#allocation10 + $0x4] sm:$0xf] }
  0xf6   : > { %v627_v54 = vpop.f32.mrf.mxu3  ;;  %v1942_v48 = vor.u32 %v2166_v59, %v1941_v58  ;;  %v2146_v58 = vld [vmem:[#allocation8 + $0x58] sm:$0xf0] }
  0xf7   : > { %v761_v62 = vpop.f32.mrf.mxu2  ;;  %v695_v22 = vrot.slane %v627_v54, 7  ;;  %v787_v27 = vadd.f32 %v2272_v12, %v779_v11  ;;  %v2063_v11 = vld [vmem:[#allocation8 + $0xb0] sm:$0xf] }
  0xf8   : > { %v690_v26 = vpop.f32.mrf.mxu1  ;;  %1214 = vmatpush.bf16.msrb.mxu2 %v1942_v48 }
  0xf9   : > { %v705_v32 = vrot.slane %v690_v26, 1  ;;  %v699_v33 = vsel %vm697_vm3, %v694_v51, %v695_v22  ;;  %v791_v38 = vmax.f32 %v787_v27, 0.0  ;;  %v2829_v26 = vpack.c.bf16 %v2720_v14, %v2713_v10  ;;  %v2031_v27 = vld [vmem:[#allocation8 + $0x78] sm:$0xf]  ;;  %v2021_v14 = vld [vmem:[#allocation8 + $0x6c] sm:$0xf0] }
  0xfa   : > { %v721_v40 = vsel %vm2801_vm6, %v699_v33, 0.0  ;;  %v2033_v33 = vld [vmem:[#allocation8 + $0x84] sm:$0xf0] }
  0xfb   : > { %v710_v42 = vsel %vm706_vm2, %v705_v32, %v702_v8  ;;  %v762_v46 = vadd.f32 %v761_v62, %v721_v40  ;;  %v707_v47 = vsel %vm706_vm2, %v704_v52, %v705_v32  ;;  %v1922_v52 = vor.u32 %v2159_v60, %v1919_v61  ;;  %v1929_v62 = vld [vmem:[#allocation10 + $0x18] sm:$0xf]  ;;  %v2147_v40 = vld [vmem:[#allocation8 + $0x64] sm:$0xf] }
  0xfc   : > { %v777_v49 = vsel %vm2811_vm7, %v710_v42, 0.0  ;;  %v2056_v8 = vor.u32 %v2157_v6, %v2055_v5  ;;  %v2027_v42 = vld [vmem:[#allocation8 + $0x68] sm:$0xf]  ;;  %v1949_v60 = vld [vmem:[#allocation10 + $0x38] sm:$0xf] }
  0xfd   : > { %v780_v51 = vadd.f32 %v762_v46, %v707_v47  ;;  %1235 = vmatpush.bf16.msra.mxu3 %v1922_v52  ;;  %v1961_v47 = vld [vmem:[#allocation10 + $0x50] sm:$0xf]  ;;  %v2167_v61 = vld [vmem:[#allocation10 + $0x40] sm:$0xf0]  ;;  %v2003_v5 = vld [vmem:[#allocation8 + $0x38] sm:$0xf] }
  0xfe   : > { %v629_v63 = vpop.f32.mrf.mxu3  ;;  %1394 = vmatpush.bf16.msra.mxu1 %v2056_v8  ;;  %v1950_v52 = vor.u32 %v2167_v61, %v1949_v60  ;;  %v1937_v8 = vld [vmem:[#allocation10 + $0x20] sm:$0xf] }
  0xff   : > { %v696_v4 = vrot.slane %v629_v63, 7  ;;  %v763_v37 = vpop.f32.mrf.mxu2  ;;  %v788_v54 = vadd.f32 %v2272_v12, %v780_v51  ;;  %v2163_v63 = vld [vmem:[#allocation10 + $0x20] sm:$0xf0]  ;;  %v2007_v51 = vld [vmem:[#allocation8 + $0x48] sm:$0xf] }
 0x100   : > { %v1930_v0 = vor.u32 %v2163_v63, %v1929_v62  ;;  %v1995_v63 = vld [vmem:[#allocation8 + $0x30] sm:$0xf] }
 0x101   : > { %v701_v15 = vsel %vm697_vm3, %v696_v4, %v693_v55  ;;  %v698_v36 = vsel %vm697_vm3, %v695_v22, %v696_v4  ;;  %v792_v56 = vmax.f32 %v788_v54, 0.0  ;;  %v1918_v4 = vor.u32 %v2160_v2, %v1917_v1  ;;  %v2051_v22 = vld [vmem:[#allocation8 + $0x98] sm:$0xf]  ;;  %v2144_v54 = vld [vmem:[#allocation8 + $0x4c] sm:$0xf] }
 0x102   : > { %v719_v19 = vsel %vm2786_vm5, %v701_v15, 0.0  ;;  %v764_v43 = vadd.f32 %v763_v37, %v698_v36  ;;  %1215 = vmatpush.bf16.msrb.mxu2 %v1930_v0  ;;  %v2060_v15 = vor.u32 %v2156_v7, %v2057_v9  ;;  %1395 = vmatpush.bf16.msra.mxu1 %v2044_v20  ;;  %v2152_v36 = vld [vmem:[#allocation8 + $0x88] sm:$0xf0]  ;;  %v2142_v0 = vld [vmem:[#allocation8 + $0x38] sm:$0xf0] }
 0x103   : > { %v757_v23 = vadd.f32 %v756_v44, %v719_v19  ;;  %v2153_v19 = vld [vmem:[#allocation8 + $0x94] sm:$0xf]  ;;  %v2040_v37 = vor.u32 %v2152_v36, %v2039_v34  ;;  %v1996_v2 = vor.u32 %v2142_v0, %v1995_v63  ;;  %v2143_v7 = vld [vmem:[#allocation8 + $0x40] sm:$0xf0]  ;;  %v2164_v9 = vld [vmem:[#allocation10 + $0x28] sm:$0xf0] }
 0x104   : > { %v781_v50 = vadd.f32 %v777_v49, %v764_v43  ;;  %v2048_v24 = vor.u32 %v2153_v19, %v2045_v21  ;;  %v2149_v43 = vld [vmem:[#allocation8 + $0x70] sm:$0xf0]  ;;  %v2170_v49 = vld [vmem:[#allocation10 + $0x58] sm:$0xf0]  ;;  %v1985_v19 = vld [vmem:[#allocation8 + $0x24] sm:$0xf0] }
 0x105   : > { %v778_v28 = vadd.f32 %v757_v23, %v709_v25  ;;  %v2155_v23 = vld [vmem:[#allocation8 + $0xa0] sm:$0xf0]  ;;  %v2028_v46 = vor.u32 %v2149_v43, %v2027_v42  ;;  %v2141_v1 = vld [vmem:[#allocation8 + $0x34] sm:$0xf]  ;;  %v1991_v20 = vld [vmem:[#allocation8 + $0x20] sm:$0xf] }
 0x106   : > { %v789_v53 = vadd.f32 %v2272_v12, %v781_v50  ;;  %1216 = vmatpush.bf16.msrb.mxu2 %v1918_v4  ;;  %v2052_v25 = vor.u32 %v2155_v23, %v2051_v22  ;;  %v1962_v50 = vor.u32 %v2170_v49, %v1961_v47  ;;  %v1997_v4 = vld [vmem:[#allocation8 + $0x3c] sm:$0xf0]  ;;  %v2140_v21 = vld [vmem:[#allocation8 + $0x28] sm:$0xf0]  ;;  %v1988_v23 = vor.u32 %v2138_v17, %v1985_v19  ;;  %v1979_v36 = vld [vmem:[#allocation8 + $0x8] sm:$0xf] }
 0x107   : > { %v786_v35 = vadd.f32 %v2272_v12, %v778_v28  ;;  %v2158_v12 = vld [vmem:[#allocation8 + $0xb8] sm:$0xf0]  ;;  %v2151_v28 = vld [vmem:[#allocation8 + $0x80] sm:$0xf0]  ;;  %v2000_v6 = vor.u32 %v2141_v1, %v1997_v4 }
 0x108   : > { %v793_v55 = vmax.f32 %v789_v53, 0.0  ;;  %v2064_v16 = vor.u32 %v2158_v12, %v2063_v11  ;;  %v2032_v32 = vor.u32 %v2151_v28, %v2031_v27  ;;  %v2145_v53 = vld [vmem:[#allocation8 + $0x50] sm:$0xf0]  ;;  %1251 = vmatpush.bf16.msrb.mxu0 %v1962_v50  ;;  %v2004_v11 = vor.u32 %v2143_v7, %v2003_v5  ;;  %v1971_v28 = vld [vmem:[#allocation8] sm:$0xf] }
 0x109   : > { %v790_v39 = vmax.f32 %v786_v35, 0.0  ;;  %1963 = vmatmul.msk.bf16.vlgmr.msrb.gmra.mxu2 %vm606_vm11, %v2718_v13  ;;  %v2036_v35 = vor.u32 %v2150_v30, %v2033_v33  ;;  %v1938_v12 = vor.u32 %v2164_v9, %v1937_v8  ;;  %v2161_v27 = vld [vmem:[#allocation10 + $0x10] sm:$0xf0]  ;;  %v2135_v33 = vld [vmem:[#allocation8 + $0x4] sm:$0xf] }
 0x10a   : > { %v795_v57 = vpack.c.bf16 %v793_v55, %v792_v56  ;;  %1413 = vmatpush.bf16.msra.mxu2 %v2060_v15  ;;  %1396 = vmatpush.bf16.msra.mxu1 %v2032_v32  ;;  %v2008_v55 = vor.u32 %v2145_v53, %v2007_v51  ;;  %v2009_v56 = vld [vmem:[#allocation8 + $0x54] sm:$0xf0]  ;;  %v2136_v32 = vld [vmem:[#allocation8 + $0x8] sm:$0xf0] }
 0x10b   : > { %v794_v44 = vpack.c.bf16 %v791_v38, %v790_v39  ;;  %v2019_v38 = vld [vmem:[#allocation8 + $0x60] sm:$0xf]  ;;  %v2148_v39 = vld [vmem:[#allocation8 + $0x68] sm:$0xf0]  ;;  %v2012_v59 = vor.u32 %v2144_v54, %v2009_v56  ;;  %v1983_v15 = vld [vmem:[#allocation8 + $0x18] sm:$0xf]  ;;  %v1972_v34 = vor.u32 %v2136_v32, %v1971_v28 }
 0x10c   : > { %v2020_v10 = vor.u32 %v2148_v39, %v2019_v38  ;;  %1252 = vmatpush.bf16.msrb.mxu0 %v1950_v52 }
 0x10d   : > { %868 = vmatmul.bf16.vlgmr.msrb.gmra.mxu3 %v794_v44  ;;  %969 = vmatmul.bf16.vlgmr.msra.gmra.mxu0 %v794_v44 }
 0x10e   : > { %1056 = vmatmul.bf16.vlgmr.msrb.gmra.mxu1 %v794_v44  ;;  %1432 = vmatpush.bf16.msrb.mxu3 %v2064_v16  ;;  %v2024_v44 = vor.u32 %v2147_v40, %v2021_v14  ;;  %v2139_v16 = vld [vmem:[#allocation8 + $0x20] sm:$0xf0] }
 0x10f   : > { %1414 = vmatpush.bf16.msra.mxu2 %v2048_v24  ;;  %1397 = vmatpush.bf16.msra.mxu1 %v2020_v10  ;;  %v1984_v18 = vor.u32 %v2139_v16, %v1983_v15  ;;  %v1992_v24 = vor.u32 %v2140_v21, %v1991_v20 }
 0x110   : > { %1253 = vmatpush.bf16.msrb.mxu0 %v1938_v12 }
 0x112   : > { %1433 = vmatpush.bf16.msrb.mxu3 %v2052_v25  ;;  %v1925_v25 = vld [vmem:[#allocation10 + $0x8] sm:$0xf] }
 0x113   : > { %1415 = vmatpush.bf16.msra.mxu2 %v2036_v35  ;;  %1398 = vmatpush.bf16.msra.mxu1 %v2008_v55  ;;  %v1926_v30 = vor.u32 %v2161_v27, %v1925_v25  ;;  %v1973_v35 = vld [vmem:[#allocation8 + $0xc] sm:$0xf0] }
 0x114   : > { %v1976_v38 = vor.u32 %v2135_v33, %v1973_v35 }
 0x115   : > { %1254 = vmatpush.bf16.msrb.mxu0 %v1926_v30 }
 0x116   : > { %1434 = vmatpush.bf16.msrb.mxu3 %v2040_v37  ;;  %v2137_v37 = vld [vmem:[#allocation8 + $0x10] sm:$0xf0] }
 0x117   : > { %1416 = vmatpush.bf16.msra.mxu2 %v2024_v44  ;;  %1399 = vmatpush.bf16.msra.mxu1 %v1996_v2  ;;  %v1980_v39 = vor.u32 %v2137_v37, %v1979_v36 }
 0x119   : > { %1964 = vmatmul.msk.bf16.gmra.mxu2 %vm606_vm11, %v2829_v26 }
 0x11a   : > { %1435 = vmatpush.bf16.msrb.mxu3 %v2028_v46 }
 0x11b   : > { %1417 = vmatpush.bf16.msra.mxu2 %v2012_v59  ;;  %1400 = vmatpush.bf16.msra.mxu1 %v1984_v18  ;;  %v2273_v59 = vld [vmem:[%s2991_s4] ss:$0 sm:$0xff] }
 0x11d   : > { %873 = vmatmul.bf16.gmra.mxu3 %v795_v57  ;;  %974 = vmatmul.bf16.gmra.mxu0 %v795_v57 }
 0x11e   : > { %1061 = vmatmul.bf16.gmra.mxu1 %v795_v57  ;;  %v2015_v57 = vld [vmem:[#allocation8 + $0x50] sm:$0xf] }
 0x11f   : > { %v2016_v48 = vor.u32 %v2146_v58, %v2015_v57  ;;  %1418 = vmatpush.bf16.msra.mxu2 %v2000_v6  ;;  %1401 = vmatpush.bf16.msra.mxu1 %v1972_v34 }
 0x121   : > { %1436 = vmatpush.bf16.msrb.mxu3 %v2016_v48 }
 0x123   : > { %1419 = vmatpush.bf16.msra.mxu2 %v1988_v23 }
 0x125   : > { %1437 = vmatpush.bf16.msrb.mxu3 %v2004_v11 }
 0x127   : > { %1420 = vmatpush.bf16.msra.mxu2 %v1976_v38 }
 0x129   : > { %1438 = vmatpush.bf16.msrb.mxu3 %v1992_v24 }
 0x12d   : > { %1965 = vmatmul.msk.bf16.vlgmr.msra.gmra.mxu3 %vm606_vm11, %v2718_v13  ;;  %1967 = vmatmul.msk.bf16.vlgmr.msrb.gmra.mxu0 %vm606_vm11, %v2718_v13 }
 0x12e   : > { %1439 = vmatpush.bf16.msrb.mxu3 %v1980_v39 }
 0x13d   : > { %1966 = vmatmul.msk.bf16.gmra.mxu3 %vm606_vm11, %v2829_v26  ;;  %1968 = vmatmul.msk.bf16.gmra.mxu0 %vm606_vm11, %v2829_v26 }
 0x18a   : > { %v2835_v62 = vpop.f32.mrf.mxu0 }
 0x18b   : > { %v1057_v10 = vpop.f32.mrf.mxu1  ;;  %v988_v60 = vrot.slane %v2835_v62, 1 }
 0x18c   : > { %v1218_v24 = vpop.f32.mrf.mxu2 }
 0x190   : > { %v869_v22 = vpop.f32.mrf.mxu3 }
 0x191   : > { %v980_v49 = vrot.slane %v869_v22, 7 }
 0x192   : > { %v972_v40 = vpop.f32.mrf.mxu0 }
 0x193   : > { %v1059_v43 = vpop.f32.mrf.mxu1  ;;  %v989_v50 = vrot.slane %v972_v40, 1 }
 0x194   : > { %v1220_v27 = vpop.f32.mrf.mxu2 }
 0x195   : > { %v994_v29 = vsel %vm706_vm2, %v988_v60, %v989_v50 }
 0x198   : > { %v871_v14 = vpop.f32.mrf.mxu3 }
 0x199   : > { %v981_v44 = vrot.slane %v871_v14, 7 }
 0x19a   : > { %v975_v42 = vpop.f32.mrf.mxu0 }
 0x19b   : > { %v990_v47 = vrot.slane %v975_v42, 1  ;;  %v986_v51 = vsel %vm697_vm3, %v980_v49, %v981_v44  ;;  %v1062_v57 = vpop.f32.mrf.mxu1 }
 0x19c   : > { %v1060_v54 = vadd.f32 %v1059_v43, %v986_v51  ;;  %v1223_v45 = vpop.f32.mrf.mxu2 }
 0x19d   : > { %v993_v53 = vsel %vm706_vm2, %v989_v50, %v990_v47 }
 0x19e   : > { %v1068_v13 = vsel %vm2772_vm4, %v993_v53, 0.0 }
 0x19f   : > { %v1072_v58 = vadd.f32 %v1068_v13, %v1060_v54 }
 0x1a0   : > { %v874_v46 = vpop.f32.mrf.mxu3 }
 0x1a1   : > { %v982_v26 = vrot.slane %v874_v46, 7  ;;  %v1080_v0 = vadd.f32 %v2273_v59, %v1072_v58 }
 0x1a2   : > { %v977_v63 = vpop.f32.mrf.mxu0 }
 0x1a3   : > { %v985_v2 = vsel %vm697_vm3, %v981_v44, %v982_v26  ;;  %v991_v4 = vrot.slane %v977_v63, 1  ;;  %v1084_v7 = vmax.f32 %v1080_v0, 0.0  ;;  %v1064_v8 = vpop.f32.mrf.mxu1 }
 0x1a4   : > { %v998_v3 = vsel %vm2801_vm6, %v985_v2, 0.0  ;;  %v1225_v32 = vpop.f32.mrf.mxu2  ;;  %v2172_v2 = vld [vmem:[%s2995_s8 + $0x8] sm:$0xff] }
 0x1a5   : > { %v995_v9 = vsel %vm706_vm2, %v991_v4, %v988_v60  ;;  %v1063_v15 = vadd.f32 %v1062_v57, %v998_v3  ;;  %v992_v16 = vsel %vm706_vm2, %v990_v47, %v991_v4  ;;  %v2173_v4 = vld [vmem:[%s2995_s8 + $0x10] sm:$0xff] }
 0x1a6   : > { %v1070_v17 = vsel %vm2811_vm7, %v995_v9, 0.0 }
 0x1a7   : > { %v1073_v19 = vadd.f32 %v1063_v15, %v992_v16 }
 0x1a8   : > { %v876_v55 = vpop.f32.mrf.mxu3 }
 0x1a9   : > { %v983_v56 = vrot.slane %v876_v55, 7  ;;  %v1081_v20 = vadd.f32 %v2273_v59, %v1073_v19 }
 0x1aa   : > { %v1256_v34 = vpop.f32.mrf.mxu0 }
 0x1ab   : > { %v987_v48 = vsel %vm697_vm3, %v983_v56, %v980_v49  ;;  %v984_v6 = vsel %vm697_vm3, %v982_v26, %v983_v56  ;;  %v1085_v22 = vmax.f32 %v1081_v20, 0.0 }
 0x1ac   : > { %v996_v61 = vsel %vm2786_vm5, %v987_v48, 0.0  ;;  %v1065_v11 = vadd.f32 %v1064_v8, %v984_v6  ;;  %v2171_v48 = vld [vmem:[%s2995_s8] sm:$0xff] }
 0x1ad   : > { %v1058_v52 = vadd.f32 %v1057_v10, %v996_v61  ;;  %v1465_v6 = vld [vmem:[%s2994_s7] sm:$0x7] }
 0x1ae   : > { %v1074_v18 = vadd.f32 %v1070_v17, %v1065_v11  ;;  %v2903_v8 = vperm.slane %v1465_v6, 1  ;;  %v2908_v16 = vperm.slane %v1465_v6, 2 }
 0x1af   : > { %v1071_v1 = vadd.f32 %v1058_v52, %v994_v29 }
 0x1b0   : > { %v1082_v31 = vadd.f32 %v2273_v59, %v1074_v18  ;;  %v1237_v25 = vpop.f32.mrf.mxu3 }
 0x1b1   : > { %v1079_v5 = vadd.f32 %v2273_v59, %v1071_v1 }
 0x1b2   : > { %v1086_v21 = vmax.f32 %v1082_v31, 0.0  ;;  %v1258_v38 = vpop.f32.mrf.mxu0 }
 0x1b3   : > { %v1083_v62 = vmax.f32 %v1079_v5, 0.0  ;;  %v2174_v5 = vld [vmem:[%s2995_s8 + $0x18] sm:$0xff] }
 0x1b4   : > { %v1088_v23 = vpack.c.bf16 %v1086_v21, %v1085_v22 }
 0x1b5   : > { %v1087_v12 = vpack.c.bf16 %v1084_v7, %v1083_v62  ;;  %v2897_v62 = vperm.slane %v1465_v6, 0 }
 0x1b7   : > { %1402 = vmatmul.bf16.vlgmr.msra.gmra.mxu1 %v1087_v12  ;;  %1421 = vmatmul.bf16.vlgmr.msra.gmra.mxu2 %v1087_v12 }
 0x1b8   : > { %1440 = vmatmul.bf16.vlgmr.msrb.gmra.mxu3 %v1087_v12  ;;  %v1239_v28 = vpop.f32.mrf.mxu3 }
 0x1ba   : > { %v1261_v14 = vpop.f32.mrf.mxu0 }
 0x1c0   : > { %v1242_v30 = vpop.f32.mrf.mxu3 }
 0x1c2   : > { %v1263_v13 = vpop.f32.mrf.mxu0 }
 0x1c7   : > { %1407 = vmatmul.bf16.gmra.mxu1 %v1088_v23  ;;  %1426 = vmatmul.bf16.gmra.mxu2 %v1088_v23 }
 0x1c8   : > { %1445 = vmatmul.bf16.gmra.mxu3 %v1088_v23  ;;  %v1244_v41 = vpop.f32.mrf.mxu3 }
 0x234   : > { %v1403_v33 = vpop.f32.mrf.mxu1 }
 0x235   : > { %v1404_v51 = vadd.f32 %v1403_v33, %v1218_v24 }
 0x23a   : > { %v1422_v35 = vpop.f32.mrf.mxu2 }
 0x23b   : > { %v1441_v36 = vpop.f32.mrf.mxu3  ;;  %v1423_v29 = vadd.f32 %v1422_v35, %v1237_v25 }
 0x23c   : > { %v1405_v37 = vpop.f32.mrf.mxu1  ;;  %v1442_v63 = vadd.f32 %v1441_v36, %v1256_v34 }
 0x23d   : > { %v1406_v49 = vadd.f32 %v1405_v37, %v1220_v27 }
 0x23f   : > { %v1459_v54 = vpack.c.bf16 %v1406_v49, %v1404_v51 }
 0x242   : > { %v1424_v39 = vpop.f32.mrf.mxu2 }
 0x243   : > { %v1443_v40 = vpop.f32.mrf.mxu3  ;;  %v1425_v60 = vadd.f32 %v1424_v39, %v1239_v28 }
 0x244   : > { %v1408_v10 = vpop.f32.mrf.mxu1  ;;  %v1444_v26 = vadd.f32 %v1443_v40, %v1258_v38 }
 0x245   : > { %v1409_v46 = vadd.f32 %v1408_v10, %v1223_v45  ;;  %v1460_v0 = vpack.c.bf16 %v1425_v60, %v1423_v29 }
 0x246   : > { %v1461_v1 = vpack.c.bf16 %v1444_v26, %v1442_v63 }
 0x24a   : > { %v1427_v42 = vpop.f32.mrf.mxu2 }
 0x24b   : > { %v1446_v43 = vpop.f32.mrf.mxu3  ;;  %v1428_v55 = vadd.f32 %v1427_v42, %v1242_v30 }
 0x24c   : > { %v1410_v44 = vpop.f32.mrf.mxu1  ;;  %v1447_v58 = vadd.f32 %v1446_v43, %v1261_v14 }
 0x24d   : > { %v1411_v47 = vadd.f32 %v1410_v44, %v1225_v32 }
 0x24f   : > { %v1462_v50 = vpack.c.bf16 %v1411_v47, %v1409_v46 }
 0x251   : > { %1512 = vmatpush.bf16.msra.mxu0 %v1462_v50 }
 0x252   : > { %v1429_v53 = vpop.f32.mrf.mxu2 }
 0x253   : > { %v1430_v56 = vadd.f32 %v1429_v53, %v1244_v41  ;;  %v1448_v57 = vpop.f32.mrf.mxu3 }
 0x254   : > { %v1449_v59 = vadd.f32 %v1448_v57, %v1263_v13 }
 0x255   : > { %v1463_v61 = vpack.c.bf16 %v1430_v56, %v1428_v55  ;;  %1513 = vmatpush.bf16.msra.mxu0 %v1459_v54 }
 0x256   : > { %v1464_v52 = vpack.c.bf16 %v1449_v59, %v1447_v58 }
 0x257   : > { %1541 = vmatpush.bf16.msrb.mxu1 %v1463_v61 }
 0x258   : > { %1570 = vmatpush.bf16.msrb.mxu2 %v1464_v52  ;;  %2081 = vmatmul.msk.bf16.vlgmr.msra.gmra.mxu0 %vm1493_vm8, %v2171_v48 }
 0x25b   : > { %1542 = vmatpush.bf16.msrb.mxu1 %v1460_v0 }
 0x25c   : > { %1571 = vmatpush.bf16.msrb.mxu2 %v1461_v1 }
 0x25e   : > { %2085 = vmatmul.msk.bf16.vlgmr.msrb.gmra.mxu1 %vm1493_vm8, %v2171_v48 }
 0x25f   : > { %2089 = vmatmul.msk.bf16.vlgmr.msrb.gmra.mxu2 %vm1493_vm8, %v2171_v48 }
 0x268   : > { %2082 = vmatmul.msk.bf16.gmra.mxu0 %vm1493_vm8, %v2172_v2 }
 0x26e   : > { %2086 = vmatmul.msk.bf16.gmra.mxu1 %vm1493_vm8, %v2172_v2 }
 0x26f   : > { %2090 = vmatmul.msk.bf16.gmra.mxu2 %vm1493_vm8, %v2172_v2 }
 0x278   : > { %2083 = vmatmul.msk.bf16.gmra.mxu0 %vm1493_vm8, %v2173_v4 }
 0x27e   : > { %2087 = vmatmul.msk.bf16.gmra.mxu1 %vm1493_vm8, %v2173_v4 }
 0x27f   : > { %2091 = vmatmul.msk.bf16.gmra.mxu2 %vm1493_vm8, %v2173_v4 }
 0x288   : > { %2084 = vmatmul.msk.bf16.gmra.mxu0 %vm1493_vm8, %v2174_v5 }
 0x28e   : > { %2088 = vmatmul.msk.bf16.gmra.mxu1 %vm1493_vm8, %v2174_v5 }
 0x28f   : > { %2092 = vmatmul.msk.bf16.gmra.mxu2 %vm1493_vm8, %v2174_v5 }
 0x2d5   : > { %v1515_v7 = vpop.f32.mrf.mxu0 }
 0x2d6   : > { %v1516_v3 = vadd.f32 %v1515_v7, %v2897_v62 }
 0x2d8   : > { %1593 = vst [vmem:[%s2900_s20] sm:$0xff] %v1516_v3 }
 0x2db   : > { %v1544_v9 = vpop.f32.mrf.mxu1 }
 0x2dc   : > { %v1545_v11 = vadd.f32 %v1544_v9, %v2903_v8 }
 0x2dd   : > { %v1517_v12 = vpop.f32.mrf.mxu0 }
 0x2de   : > { %1594 = vst [vmem:[%s2900_s20 + $0x8] sm:$0xff] %v1545_v11  ;;  %v1518_v15 = vadd.f32 %v1517_v12, %v2897_v62 }
 0x2e0   : > { %1596 = vst [vmem:[%s2900_s20 + $0x18] sm:$0xff] %v1518_v15 }
 0x2e2   : > { %v1573_v17 = vpop.f32.mrf.mxu2 }
 0x2e3   : > { %v1574_v18 = vadd.f32 %v1573_v17, %v2908_v16  ;;  %v1546_v19 = vpop.f32.mrf.mxu1 }
 0x2e4   : > { %v1547_v31 = vadd.f32 %v1546_v19, %v2903_v8 }
 0x2e5   : > { %1595 = vst [vmem:[%s2900_s20 + $0x10] sm:$0xff] %v1574_v18  ;;  %v1520_v20 = vpop.f32.mrf.mxu0 }
 0x2e6   : > { %1597 = vst [vmem:[%s2900_s20 + $0x20] sm:$0xff] %v1547_v31  ;;  %v1521_v21 = vadd.f32 %v1520_v20, %v2897_v62 }
 0x2e8   : > { %1599 = vst [vmem:[%s2900_s20 + $0x30] sm:$0xff] %v1521_v21 }
 0x2ea   : > { %v1575_v22 = vpop.f32.mrf.mxu2 }
 0x2eb   : > { %v1576_v23 = vadd.f32 %v1575_v22, %v2908_v16  ;;  %v1549_v24 = vpop.f32.mrf.mxu1 }
 0x2ec   : > { %v1550_v25 = vadd.f32 %v1549_v24, %v2903_v8 }
 0x2ed   : > { %1598 = vst [vmem:[%s2900_s20 + $0x28] sm:$0xff] %v1576_v23  ;;  %v1522_v27 = vpop.f32.mrf.mxu0 }
 0x2ee   : > { %1600 = vst [vmem:[%s2900_s20 + $0x38] sm:$0xff] %v1550_v25  ;;  %v1523_v28 = vadd.f32 %v1522_v27, %v2897_v62 }
 0x2f0   : > { %1602 = vst [vmem:[%s2900_s20 + $0x48] sm:$0xff] %v1523_v28 }
 0x2f2   : > { %v1578_v45 = vpop.f32.mrf.mxu2 }
 0x2f3   : > { %v1579_v30 = vadd.f32 %v1578_v45, %v2908_v16  ;;  %v1551_v32 = vpop.f32.mrf.mxu1 }
 0x2f4   : > { %v1552_v41 = vadd.f32 %v1551_v32, %v2903_v8 }
 0x2f5   : > { %1601 = vst [vmem:[%s2900_s20 + $0x40] sm:$0xff] %v1579_v30  ;;  %v1525_v33 = vpop.f32.mrf.mxu0 }
 0x2f6   : > { %1603 = vst [vmem:[%s2900_s20 + $0x50] sm:$0xff] %v1552_v41  ;;  %v1526_v34 = vadd.f32 %v1525_v33, %v2897_v62 }
 0x2f8   : > { %1605 = vst [vmem:[%s2900_s20 + $0x60] sm:$0xff] %v1526_v34 }
 0x2fa   : > { %v1580_v35 = vpop.f32.mrf.mxu2 }
 0x2fb   : > { %v1581_v36 = vadd.f32 %v1580_v35, %v2908_v16  ;;  %v1554_v37 = vpop.f32.mrf.mxu1 }
 0x2fc   : > { %v1555_v38 = vadd.f32 %v1554_v37, %v2903_v8 }
 0x2fd   : > { %1604 = vst [vmem:[%s2900_s20 + $0x58] sm:$0xff] %v1581_v36  ;;  %v1527_v39 = vpop.f32.mrf.mxu0 }
 0x2fe   : > { %1606 = vst [vmem:[%s2900_s20 + $0x68] sm:$0xff] %v1555_v38  ;;  %v1528_v40 = vadd.f32 %v1527_v39, %v2897_v62 }
 0x300   : > { %1608 = vst [vmem:[%s2900_s20 + $0x78] sm:$0xff] %v1528_v40 }
 0x302   : > { %v1583_v10 = vpop.f32.mrf.mxu2 }
 0x303   : > { %v1584_v14 = vadd.f32 %v1583_v10, %v2908_v16  ;;  %v1556_v42 = vpop.f32.mrf.mxu1 }
 0x304   : > { %v1557_v43 = vadd.f32 %v1556_v42, %v2903_v8 }
 0x305   : > { %1607 = vst [vmem:[%s2900_s20 + $0x70] sm:$0xff] %v1584_v14  ;;  %v1530_v44 = vpop.f32.mrf.mxu0 }
 0x306   : > { %1609 = vst [vmem:[%s2900_s20 + $0x80] sm:$0xff] %v1557_v43  ;;  %v1531_v46 = vadd.f32 %v1530_v44, %v2897_v62 }
 0x308   : > { %1611 = vst [vmem:[%s2900_s20 + $0x90] sm:$0xff] %v1531_v46 }
 0x30a   : > { %v1585_v47 = vpop.f32.mrf.mxu2 }
 0x30b   : > { %v1586_v49 = vadd.f32 %v1585_v47, %v2908_v16  ;;  %v1559_v50 = vpop.f32.mrf.mxu1 }
 0x30c   : > { %v1560_v51 = vadd.f32 %v1559_v50, %v2903_v8 }
 0x30d   : > { %1610 = vst [vmem:[%s2900_s20 + $0x88] sm:$0xff] %v1586_v49  ;;  %v1532_v53 = vpop.f32.mrf.mxu0 }
 0x30e   : > { %1612 = vst [vmem:[%s2900_s20 + $0x98] sm:$0xff] %v1560_v51  ;;  %v1533_v54 = vadd.f32 %v1532_v53, %v2897_v62 }
 0x310   : > { %1614 = vst [vmem:[%s2900_s20 + $0xa8] sm:$0xff] %v1533_v54 }
 0x312   : > { %v1588_v13 = vpop.f32.mrf.mxu2 }
 0x313   : > { %v1589_v55 = vadd.f32 %v1588_v13, %v2908_v16  ;;  %v1561_v56 = vpop.f32.mrf.mxu1 }
 0x314   : > { %v1562_v57 = vadd.f32 %v1561_v56, %v2903_v8 }
 0x315   : > { %1613 = vst [vmem:[%s2900_s20 + $0xa0] sm:$0xff] %v1589_v55 }
 0x316   : > { %1615 = vst [vmem:[%s2900_s20 + $0xb0] sm:$0xff] %v1562_v57 }
 0x31a   : > { %v1590_v58 = vpop.f32.mrf.mxu2 }
 0x31b   : > { %v1591_v59 = vadd.f32 %v1590_v58, %v2908_v16 }
 0x31d   : > { %1616 = vst [vmem:[%s2900_s20 + $0xb8] sm:$0xff] %v1591_v59 }
 0x31e   : > { %2467 = shalt.err (!%p2464_p10)
}
 0x31f   : > { %s2526_s5 = smov 384   ;;  %s2527_s20 = smov 24  }
 0x320   : > { %2195 = dma.vmem_to_hbm [thread:$0]  (%p2662_p3), %s1632_s17, 3072, %s1634_s18, %s1618_s13, %s2526_s5, %s2526_s5, %s2527_s20  }
 0x321 PF: > { %s1648_s29 = sand.u32 1, %s2502_s30   ;;  %p3017_p12 = scmp.ge.s32.totalorder %s2514_s12, 2 }
 0x322   : > { %s1649_s26 = scalar_lea.sflag [#allocation4], %s1648_s29 }
 0x323   : > { %p2215_p13 = pnand %p3017_p12, %p2613_p6 }
 0x325   : > { %p2216_p0 = pneg %p2215_p13 }
 0x327   : > { %2497 = dma.done.wait (%p2216_p0), %s1649_s26, 3072  }
 0x328   : > { %2499 = vsyncadd (%p2216_p0), %s1649_s26, 4294964224  ;;  %p24_p5 = scmp.ge.s32.totalorder %s2652_s21, 4   ;;  %s3018_s30 = smov %s2506_s10 }
 0x329   : > { %s3019_s10 = smov %s2510_s11  ;;  %s3020_s11 = smov %s2668_s27 }
 0x32a   : > { %s3021_s12 = smov %s2652_s21  ;;  %26 = sbr.rel (!%p24_p5) target bundleno = 11 (0xb), region = 121 }
 0x32f   :  { %1655 = vsyncpa [#allocation3], 1 }
 0x330   :  { %1657 = vsyncpa [#allocation3 + $0x1], 1 }
 0x331   :  { %1658 = vsyncpa [#allocation6], 1 }
 0x332   :  { %1659 = vsyncpa [#allocation9], 1 }
 0x333   :  { %1660 = vsyncpa [#allocation4], 1 }
 0x334   :  { %1662 = vsyncpa [#allocation4 + $0x1], 1 }

</bundles_post_ra>
